<compile_context>
chip_gen: v6e
topology: v6e:2x2x1
jax: 0.10.0
libtpu: 0.0.40
codegen_flags: <defaults>
</compile_context>

<pallas_src>
import functools

import jax
import jax.numpy as jnp
from jax import lax
from jax.experimental import pallas as pl
from jax.experimental.pallas import tpu as pltpu


NEG_BIAS = -1e30  # large-but-finite mask value (review correctness item)


# ----------------------------- shared math helpers ---------------------------

def _layernorm(x, gamma, beta, eps=1e-5):
    mu = jnp.mean(x, axis=-1, keepdims=True)
    var = jnp.mean((x - mu) ** 2, axis=-1, keepdims=True)
    return (x - mu) * lax.rsqrt(var + eps) * gamma + beta


def _round_up(a, b):
    return (a + b - 1) // b * b


# ------------------------------- Pallas kernels -------------------------------

def _window_attention_kernel(num_heads, head_dim,
                             xq_ref, xkv_ref, mbias_ref,
                             gamma_ref, beta_ref,
                             wq_ref, bq_ref, wkv_ref, bkv_ref,
                             wp_ref, bp_ref, o_ref, av_ref):
    """One grid step = Bblk batch elements, all nW windows, flat 2-D rows.

    attn_norm(LN) -> Q/KV projections (tall stacked-row matmuls) ->
    block-diagonal scaled-dot-product attention per head (mask + rel-pos +
    cls bias pre-folded into mbias) -> softmax -> AV into a VMEM scratch at
    lane offset h*head_dim -> single output projection over K = H*D.
    """
    HD = num_heads * head_dim
    bf = jnp.bfloat16

    gamma = gamma_ref[0]              # (C,)
    beta = beta_ref[0]                # (C,)

    # LayerNorm in f32 on the flat row slabs (no 3-D reshapes in-kernel).
    xq = _layernorm(xq_ref[...], gamma, beta)            # (Rq, C)
    xkv = _layernorm(xkv_ref[...], gamma, beta)           # (Rk, C)

    # Projections: bf16 operands, f32 accumulation.  Scale already in Wq/bq.
    q = jnp.dot(xq.astype(bf), wq_ref[...],
                preferred_element_type=jnp.float32) + bq_ref[0]      # (Rq, HD)
    kv = jnp.dot(xkv.astype(bf), wkv_ref[...],
                 preferred_element_type=jnp.float32) + bkv_ref[0]    # (Rk, 2HD)

    # Cast q/k/v to bf16 once (v5e: every cast is a full-rate f32 VPU pass).
    q = q.astype(bf)
    k = kv[:, :HD].astype(bf)
    v = kv[:, HD:].astype(bf)

    for h in range(num_heads):        # short unrolled loop over heads
        sl = slice(h * head_dim, (h + 1) * head_dim)
        # Block-diagonal scores for all windows/batch-elements of this block:
        # one (Rq, D) x (Rk, D)^T matmul instead of nW tiny per-window calls.
        s = lax.dot_general(q[:, sl], k[:, sl],
                            (((1,), (1,)), ((), ())),
                            preferred_element_type=jnp.float32)       # (Rq, Rk)
        s = s + mbias_ref[h]           # bias + boundary mask + block-diag mask

        # softmax in f32; reciprocal on the EUP.
        m = jnp.max(s, axis=-1, keepdims=True)
        e = jnp.exp(s - m)
        denom = jnp.sum(e, axis=-1, keepdims=True)
        prob = e * pl.reciprocal(denom, approx=True)

        # Per-head AV straight into the (Rq, HD) scratch at its lane offset.
        av_ref[:, sl] = jnp.dot(prob.astype(bf), v[:, sl],
                                preferred_element_type=jnp.float32)

    # One output projection with K = HD (instead of H matmuls with K = D).
    y = jnp.dot(av_ref[...].astype(bf), wp_ref[...],
                preferred_element_type=jnp.float32) + bp_ref[0]       # (Rq, C)
    o_ref[...] = y


def _mlp_residual_kernel(x_ref, gamma_ref, beta_ref,
                         w1_ref, b1_ref, w2_ref, b2_ref, o_ref):
    """out = x + Linear(GELU(Linear(LayerNorm(x)))) on a (TILE_R, C) row tile."""
    x = x_ref[...]
    h = _layernorm(x, gamma_ref[0], beta_ref[0])
    h = jnp.dot(h.astype(jnp.bfloat16), w1_ref[...],
                preferred_element_type=jnp.float32) + b1_ref[0]
    h = jax.nn.gelu(h, approximate=False)          # matches nn.GELU() (exact erf)
    h = jnp.dot(h.astype(jnp.bfloat16), w2_ref[...],
                preferred_element_type=jnp.float32) + b2_ref[0]
    o_ref[...] = x + h


# ------------------------------ Pallas wrappers -------------------------------

def _pick_bblk(B, rows_per_b, target_rows=256, max_rows=512):
    """Batch elements folded into one attention grid step (a divisor of B).

    Aims for >= `target_rows` stacked rows per projection matmul (256-tall MXU
    on v6e/v7x) while capping the block-diagonal score block (VMEM-safe across
    generations incl. v7x's 64 MiB) and keeping >= 2 parallel grid steps when
    B allows (v7x has 2 TensorCores)."""
    divisors = [d for d in range(1, B + 1) if B % d == 0]
    best = 1
    for d in divisors:
        if d * rows_per_b > max_rows:
            break
        best = d
        if d * rows_per_b >= target_rows:
            break
    if B // best < 2:
        smaller = [d for d in divisors if B // d >= 2]
        if smaller:
            best = smaller[-1]
    return best


def _pad_and_flatten(x3, rows_pad):
    """(B, R, C) -> (B*rows_pad, C): zero-pad R to a sublane multiple so every
    per-grid-step row block is (8,128)-aligned and lane-dense 2-D."""
    B, R, C = x3.shape
    if rows_pad != R:
        x3 = jnp.pad(x3, ((0, 0), (0, rows_pad - R), (0, 0)))
    return x3.reshape(B * rows_pad, C)


def build_blockdiag_bias(mb, nW, Np1, Mp1, Bblk, Rq_pad, Rk_pad):
    """Per-grid-step additive score bias (H, Bblk*Rq_pad, Bblk*Rk_pad).

    Real (same batch element, same window) q/k pairs get the rel-pos + cls
    bias with the boundary mask already folded in; everything else
    (cross-window, cross-batch, sublane padding rows/cols) gets NEG_BIAS, so
    the in-kernel block-diagonal score matmul needs no extra masking."""
    r = jnp.arange(Bblk * Rq_pad)
    c = jnp.arange(Bblk * Rk_pad)
    b_q, r_in = r // Rq_pad, r % Rq_pad
    b_k, c_in = c // Rk_pad, c % Rk_pad
    valid_q = r_in < nW * Np1
    valid_k = c_in < nW * Mp1
    w_q = jnp.minimum(r_in // Np1, nW - 1)
    w_k = jnp.minimum(c_in // Mp1, nW - 1)
    n_q = r_in % Np1
    m_k = c_in % Mp1
    same = ((b_q[:, None] == b_k[None, :]) & (w_q[:, None] == w_k[None, :])
            & valid_q[:, None] & valid_k[None, :])
    gathered = mb[:, w_q[:, None], n_q[:, None], m_k[None, :]]   # (H, Rq, Rk)
    return jnp.where(same[None], gathered, jnp.float32(NEG_BIAS))


def window_attention_call(xq2d, xkv2d, mbias_blk, p,
                          B, Bblk, Rq_pad, Rk_pad, num_heads, head_dim, scale):
    C = xq2d.shape[1]
    HD = num_heads * head_dim
    Rq_blk = Bblk * Rq_pad
    Rk_blk = Bblk * Rk_pad
    bf = jnp.bfloat16

    # Fold the attention scale into Wq / bq (weight-side constant fold) and
    # keep bf16 MXU operands for all weight matrices.
    wq = (p['wq'] * scale).astype(bf)                     # (C, HD)
    bq = p['bq'] * scale                                  # (1, HD) f32
    wkv = p['wkv'].astype(bf)                             # (C, 2HD)
    wproj = p['wproj'].astype(bf)                         # (HD, C)

    kernel = functools.partial(_window_attention_kernel, num_heads, head_dim)
    return pl.pallas_call(
        kernel,
        out_shape=jax.ShapeDtypeStruct((B * Rq_pad, C), jnp.float32),
        grid=(B // Bblk,),
        in_specs=[
            pl.BlockSpec((Rq_blk, C), lambda g: (g, 0)),              # windowX rows
            pl.BlockSpec((Rk_blk, C), lambda g: (g, 0)),              # windowX_ rows
            pl.BlockSpec((num_heads, Rq_blk, Rk_blk),
                         lambda g: (0, 0, 0)),                        # masked bias
            pl.BlockSpec((1, C), lambda g: (0, 0)),                   # ln gamma
            pl.BlockSpec((1, C), lambda g: (0, 0)),                   # ln beta
            pl.BlockSpec((C, HD), lambda g: (0, 0)),                  # Wq*scale (bf16)
            pl.BlockSpec((1, HD), lambda g: (0, 0)),                  # bq*scale
            pl.BlockSpec((C, 2 * HD), lambda g: (0, 0)),              # Wkv (bf16)
            pl.BlockSpec((1, 2 * HD), lambda g: (0, 0)),              # bkv
            pl.BlockSpec((HD, C), lambda g: (0, 0)),                  # Wproj (bf16)
            pl.BlockSpec((1, C), lambda g: (0, 0)),                   # bproj
        ],
        out_specs=pl.BlockSpec((Rq_blk, C), lambda g: (g, 0)),
        scratch_shapes=[pltpu.VMEM((Rq_blk, HD), jnp.float32)],       # per-head AV
        compiler_params=pltpu.CompilerParams(
            dimension_semantics=("parallel",),            # v7x: 2 TensorCores
            vmem_limit_bytes=32 * 1024 * 1024),
    )(xq2d, xkv2d, mbias_blk,
      p['attn_norm_gamma'], p['attn_norm_beta'],
      wq, bq, wkv, p['bkv'], wproj, p['bproj'])


def mlp_residual_call(x2d, p, tile_rows=512):
    """Row-tiled residual MLP on a 2-D (R, C) slab — no host padding, no concat.

    grid = cdiv(R, tile); the ragged last block is handled by Pallas
    (LayerNorm/GELU/matmuls are row-local, OOB rows are discarded on store)."""
    R, C = x2d.shape
    inner = p['w1'].shape[1]
    bf = jnp.bfloat16

    tile = min(tile_rows, R)
    if tile % 8 != 0:
        tile = R                                   # full-extent rows: always legal
    elif tile == R and R >= 16:
        tile = _round_up(pl.cdiv(R, 2), 8)         # >=2 steps for v7x's 2 cores

    out = pl.pallas_call(
        _mlp_residual_kernel,
        out_shape=jax.ShapeDtypeStruct((R, C), jnp.float32),
        grid=(pl.cdiv(R, tile),),
        in_specs=[
            pl.BlockSpec((tile, C), lambda i: (i, 0)),
            pl.BlockSpec((1, C), lambda i: (0, 0)),
            pl.BlockSpec((1, C), lambda i: (0, 0)),
            pl.BlockSpec((C, inner), lambda i: (0, 0)),
            pl.BlockSpec((1, inner), lambda i: (0, 0)),
            pl.BlockSpec((inner, C), lambda i: (0, 0)),
            pl.BlockSpec((1, C), lambda i: (0, 0)),
        ],
        out_specs=pl.BlockSpec((tile, C), lambda i: (i, 0)),
        compiler_params=pltpu.CompilerParams(
            dimension_semantics=("parallel",),
            vmem_limit_bytes=32 * 1024 * 1024),
    )(x2d, p['mlp_norm_gamma'], p['mlp_norm_beta'],
      p['w1'].astype(bf), p['b1'], p['w2'].astype(bf), p['b2'])
    return out


# --------------------------------- glue (JAX) ---------------------------------

def build_bias(p, cfg):
    """Full (H, 1+N, 1+M) additive attention bias (rel-pos + cls biases)."""
    N, M, H = cfg['windowSize'], cfg['receptiveSize'], cfg['numHeads']
    L = (M - N) // 2
    max_disp = N - 1 + L
    coords_x = jnp.arange(N)
    coords_x_ = jnp.arange(M) - L
    rel = coords_x[:, None] - coords_x_[None, :] + max_disp          # (N, M)
    rel_bias = p['rel_pos_table'][rel.reshape(-1)].reshape(N, M, H)
    rel_bias = jnp.transpose(rel_bias, (2, 0, 1))                    # (H, N, M)
    bias = jnp.zeros((H, 1 + N, 1 + M), jnp.float32)
    bias = bias.at[:, 1:, 1:].set(rel_bias)
    bias = bias.at[:, 0, 0].set(p['cls_bias_self'][0, :, 0, 0])
    bias = bias.at[:, 0, 1:].set(p['cls_bias_up'][0, :, 0, :])
    bias = bias.at[:, 1:, 0].set(p['cls_bias_down'][0, :, :, 0])
    return bias


def build_mask(mask_left, mask_right, nW):
    """Per-window combined mask (nW, 1+N, 1+M): left mask on the first windows,
    right mask on the last windows (same as masked_fill_ on attn[:, :mc]/[:, -mc:])."""
    Np1, Mp1 = mask_left.shape[1], mask_left.shape[2]
    mc = min(mask_left.shape[0], nW)
    combined = jnp.zeros((nW, Np1, Mp1), jnp.float32)
    combined = combined.at[:mc].max(mask_left[:mc].astype(jnp.float32))
    combined = combined.at[nW - mc:].max(mask_right[-mc:].astype(jnp.float32))
    return combined


def gather_windows(windowedX, dynamic_length, shift_size):
    """Scatter-add overlapping windows back onto the timeline and average."""
    B, nW, W, C = windowedX.shape
    idx = (jnp.arange(nW)[:, None] * shift_size
           + jnp.arange(W)[None, :]).reshape(-1)                    # (nW*W,)
    src = windowedX.reshape(B, nW * W, C)
    dest = jnp.zeros((B, dynamic_length, C), jnp.float32).at[:, idx, :].add(src)
    # Count reciprocal as a (T,) vector (not a (B,T,C) scatter-add).  Positions
    # never covered by any window would be 0/0 in PyTorch; guard with max(.,1).
    cnt = jnp.zeros((dynamic_length,), jnp.float32).at[idx].add(1.0)
    cnt = jnp.maximum(cnt, 1.0)
    return dest * (1.0 / cnt)[None, :, None]


def fused_window_transformer_forward(p, x, cls, windowX, windowX_, mask, nW, cfg):
    mask_left, mask_right = mask
    B, T, C = x.shape
    N, M = cfg['windowSize'], cfg['receptiveSize']
    H, D = cfg['numHeads'], cfg['headDim']
    Np1, Mp1 = N + 1, M + 1
    shift = cfg['shiftSize']
    scale = D ** -0.5

    # Per-window masked bias (mask folded in once on the host).
    bias = build_bias(p, cfg)                               # (H, 1+N, 1+M)
    wmask = build_mask(mask_left, mask_right, nW)           # (nW, 1+N, 1+M)
    mb = bias[:, None, :, :] + NEG_BIAS * wmask[None, :, :, :]  # (H,nW,1+N,1+M)

    # Lane-dense 2-D layout: pad the per-batch row count to a sublane multiple.
    Rq_pad = _round_up(nW * Np1, 8)
    Rk_pad = _round_up(nW * Mp1, 8)
    Bblk = _pick_bblk(B, Rq_pad)
    mbias_blk = build_blockdiag_bias(mb, nW, Np1, Mp1, Bblk, Rq_pad, Rk_pad)

    xq2d = _pad_and_flatten(windowX.reshape(B, nW * Np1, C), Rq_pad)
    xkv2d = _pad_and_flatten(windowX_.reshape(B, nW * Mp1, C), Rk_pad)

    out2d = window_attention_call(xq2d, xkv2d, mbias_blk, p,
                                  B, Bblk, Rq_pad, Rk_pad, H, D, scale)
    out = out2d.reshape(B, Rq_pad, C)[:, :nW * Np1].reshape(B, nW, Np1, C)

    clsTrans = out[:, :, 0, :] + cls                                 # (B, nW, C)
    xTrans = gather_windows(out[:, :, 1:, :], T, shift) + x          # (B, T, C)

    # Two row-tiled MLP-residual calls (no concat / slice HBM round-trip).
    xOut = mlp_residual_call(xTrans.reshape(B * T, C), p).reshape(B, T, C)
    clsOut = mlp_residual_call(clsTrans.reshape(B * nW, C), p).reshape(B, nW, C)
    return xOut, clsOut


# ------------------------- pure-JAX reference (check) --------------------------

def reference_forward(p, x, cls, windowX, windowX_, mask, nW, cfg):
    mask_left, mask_right = mask
    B, T, C = x.shape
    N, M = cfg['windowSize'], cfg['receptiveSize']
    H, D = cfg['numHeads'], cfg['headDim']
    shift = cfg['shiftSize']
    HD = H * D
    scale = D ** -0.5
    g, be = p['attn_norm_gamma'][0], p['attn_norm_beta'][0]

    xn = _layernorm(windowX, g, be)
    xn_ = _layernorm(windowX_, g, be)
    q = xn @ p['wq'] + p['bq'][0]
    kv = xn_ @ p['wkv'] + p['bkv'][0]
    k, v = kv[..., :HD], kv[..., HD:]
    BnW = windowX.shape[0]
    qh = q.reshape(BnW, N + 1, H, D).transpose(0, 2, 1, 3)
    kh = k.reshape(BnW, M + 1, H, D).transpose(0, 2, 1, 3)
    vh = v.reshape(BnW, M + 1, H, D).transpose(0, 2, 1, 3)
    attn = jnp.einsum('bhnd,bhmd->bhnm', qh, kh) * scale
    attn = attn + build_bias(p, cfg)[None]
    mask_full = jnp.tile(build_mask(mask_left, mask_right, nW), (B, 1, 1))
    attn = jnp.where(mask_full[:, None] > 0, -jnp.finfo(jnp.float32).max, attn)
    attn = jax.nn.softmax(attn, axis=-1)
    out = jnp.einsum('bhnm,bhmd->bhnd', attn, vh)
    out = out.transpose(0, 2, 1, 3).reshape(BnW, N + 1, HD)
    wt = out @ p['wproj'] + p['bproj'][0]

    clsT = wt[:, :1].reshape(B, nW, C) + cls
    xT = gather_windows(wt[:, 1:].reshape(B, nW, N, C), T, shift) + x

    def mlp_res(a):
        h = _layernorm(a, p['mlp_norm_gamma'][0], p['mlp_norm_beta'][0])
        h = jax.nn.gelu(h @ p['w1'] + p['b1'][0], approximate=False)
        h = h @ p['w2'] + p['b2'][0]
        return a + h

    return mlp_res(xT), mlp_res(clsT)


# ------------------------------------ main -------------------------------------

if __name__ == "__main__":
    cfg = dict(dim=32, windowSize=8, shiftSize=4, receptiveSize=12,
               numHeads=4, headDim=8, mlpRatio=1)
    B, nW = 2, 4
    C, N, M = cfg['dim'], cfg['windowSize'], cfg['receptiveSize']
    H, D = cfg['numHeads'], cfg['headDim']
    HD = H * D
    L = (M - N) // 2
    max_disp = N - 1 + L
    inner = int(C * cfg['mlpRatio'])
    T = N + (nW - 1) * cfg['shiftSize']   # dynamic length = 20

    key = jax.random.PRNGKey(0)
    ks = jax.random.split(key, 24)

    def nrm(k, shape, std=0.02):
        return (std * jax.random.normal(k, shape)).astype(jnp.float32)

    params = {
        'attn_norm_gamma': jnp.ones((1, C), jnp.float32),
        'attn_norm_beta': jnp.zeros((1, C), jnp.float32),
        'mlp_norm_gamma': jnp.ones((1, C), jnp.float32),
        'mlp_norm_beta': jnp.zeros((1, C), jnp.float32),
        'rel_pos_table': nrm(ks[0], (2 * max_disp + 1, H)),
        'cls_bias_self': nrm(ks[1], (1, H, 1, 1)),
        'cls_bias_up': nrm(ks[2], (1, H, 1, M)),
        'cls_bias_down': nrm(ks[3], (1, H, N, 1)),
        'wq': nrm(ks[4], (C, HD)),
        'bq': nrm(ks[5], (1, HD)),
        'wkv': nrm(ks[6], (C, 2 * HD)),
        'bkv': nrm(ks[7], (1, 2 * HD)),
        'wproj': nrm(ks[8], (HD, C)),
        'bproj': nrm(ks[9], (1, C)),
        'w1': nrm(ks[10], (C, inner)),
        'b1': nrm(ks[11], (1, inner)),
        'w2': nrm(ks[12], (inner, C)),
        'b2': nrm(ks[13], (1, C)),
    }

    x = jax.random.normal(ks[14], (B, T, C), jnp.float32)
    cls = jax.random.normal(ks[15], (B, nW, C), jnp.float32)
    windowX = jax.random.normal(ks[16], (B * nW, 1 + N, C), jnp.float32)
    windowX_ = jax.random.normal(ks[17], (B * nW, 1 + M, C), jnp.float32)

    # Boundary masks (as BolT builds them): first window overflows left,
    # last window overflows right.
    mask_left = jnp.zeros((2, 1 + N, 1 + M), jnp.float32).at[0, :, 1:1 + L].set(1.0)
    mask_right = jnp.zeros((2, 1 + N, 1 + M), jnp.float32).at[1, :, 1 + M - L:].set(1.0)
    mask = (mask_left, mask_right)

    xOut, clsOut = fused_window_transformer_forward(
        params, x, cls, windowX, windowX_, mask, nW, cfg)
    jax.block_until_ready((xOut, clsOut))

    xRef, clsRef = reference_forward(
        params, x, cls, windowX, windowX_, mask, nW, cfg)
    # bf16 MXU operands (f32 accumulate) + approx reciprocal -> ~1e-3 abs error.
    assert jnp.allclose(xOut, xRef, rtol=1e-2, atol=3e-3), "xTrans mismatch"
    assert jnp.allclose(clsOut, clsRef, rtol=1e-2, atol=3e-3), "clsTrans mismatch"

    # TODO(synk): dropout (attnDrop/projDrop/mlp dropout) and the analysis-mode
    # attention-map capture (getJuiceFlow) are omitted (inference forward).
    print("KERNEL_OK")
</pallas_src>

<mosaic_0001>
module attributes {stable_mosaic.version = 11 : i64} {
  func.func @_window_attention_kernel(%arg0: i32, %arg1: memref<40x32xf32, #tpu.memory_space<vmem>>, %arg2: memref<56x32xf32, #tpu.memory_space<vmem>>, %arg3: memref<4x40x56xf32, #tpu.memory_space<vmem>>, %arg4: memref<1x32xf32, #tpu.memory_space<vmem>>, %arg5: memref<1x32xf32, #tpu.memory_space<vmem>>, %arg6: memref<32x32xbf16, #tpu.memory_space<vmem>>, %arg7: memref<1x32xf32, #tpu.memory_space<vmem>>, %arg8: memref<32x64xbf16, #tpu.memory_space<vmem>>, %arg9: memref<1x64xf32, #tpu.memory_space<vmem>>, %arg10: memref<32x32xbf16, #tpu.memory_space<vmem>>, %arg11: memref<1x32xf32, #tpu.memory_space<vmem>>, %arg12: memref<40x32xf32, #tpu.memory_space<vmem>>, %arg13: memref<40x32xf32, #tpu.memory_space<vmem>>) attributes {dimension_semantics = [#tpu.dimension_semantics<parallel>], iteration_bounds = array<i64: 2>, scalar_prefetch = 0 : i64, scratch_operands = 1 : i64, tpu.core_type = #tpu.core_type<tc>, window_params = [{transform_indices = @transform_0, window_bounds = array<i64: 40, 32>}, {transform_indices = @transform_1, window_bounds = array<i64: 56, 32>}, {pipeline_mode = #tpu.pipeline_mode<synchronous>, transform_indices = @transform_2, window_bounds = array<i64: 4, 40, 56>}, {pipeline_mode = #tpu.pipeline_mode<synchronous>, transform_indices = @transform_3, window_bounds = array<i64: 1, 32>}, {pipeline_mode = #tpu.pipeline_mode<synchronous>, transform_indices = @transform_4, window_bounds = array<i64: 1, 32>}, {pipeline_mode = #tpu.pipeline_mode<synchronous>, transform_indices = @transform_5, window_bounds = array<i64: 32, 32>}, {pipeline_mode = #tpu.pipeline_mode<synchronous>, transform_indices = @transform_6, window_bounds = array<i64: 1, 32>}, {pipeline_mode = #tpu.pipeline_mode<synchronous>, transform_indices = @transform_7, window_bounds = array<i64: 32, 64>}, {pipeline_mode = #tpu.pipeline_mode<synchronous>, transform_indices = @transform_8, window_bounds = array<i64: 1, 64>}, {pipeline_mode = #tpu.pipeline_mode<synchronous>, transform_indices = @transform_9, window_bounds = array<i64: 32, 32>}, {pipeline_mode = #tpu.pipeline_mode<synchronous>, transform_indices = @transform_10, window_bounds = array<i64: 1, 32>}, {transform_indices = @transform_11, window_bounds = array<i64: 40, 32>}]} {
    %c0 = arith.constant 0 : index
    %c0_0 = arith.constant 0 : index
    %0 = vector.load %arg4[%c0, %c0_0] : memref<1x32xf32, #tpu.memory_space<vmem>>, vector<1x32xf32>
    %1 = vector.shape_cast %0 : vector<1x32xf32> to vector<32xf32>
    %c0_1 = arith.constant 0 : index
    %c0_2 = arith.constant 0 : index
    %2 = vector.load %arg5[%c0_1, %c0_2] : memref<1x32xf32, #tpu.memory_space<vmem>>, vector<1x32xf32>
    %3 = vector.shape_cast %2 : vector<1x32xf32> to vector<32xf32>
    %c0_3 = arith.constant 0 : index
    %c0_4 = arith.constant 0 : index
    %4 = vector.load %arg1[%c0_3, %c0_4] : memref<40x32xf32, #tpu.memory_space<vmem>>, vector<40x32xf32>
    %cst = arith.constant dense<0.000000e+00> : vector<40xf32>
    %5 = vector.multi_reduction <add>, %4, %cst [1] : vector<40x32xf32> to vector<40xf32>
    %6 = vector.shape_cast %5 : vector<40xf32> to vector<40x1xf32>
    %cst_5 = arith.constant 3.200000e+01 : f32
    %7 = vector.broadcast %cst_5 : f32 to vector<40x1xf32>
    %8 = arith.divf %6, %7 : vector<40x1xf32>
    %9 = vector.broadcast %8 : vector<40x1xf32> to vector<40x32xf32>
    %10 = arith.subf %4, %9 : vector<40x32xf32>
    %11 = arith.mulf %10, %10 : vector<40x32xf32>
    %cst_6 = arith.constant dense<0.000000e+00> : vector<40xf32>
    %12 = vector.multi_reduction <add>, %11, %cst_6 [1] : vector<40x32xf32> to vector<40xf32>
    %13 = vector.shape_cast %12 : vector<40xf32> to vector<40x1xf32>
    %cst_7 = arith.constant 3.200000e+01 : f32
    %14 = vector.broadcast %cst_7 : f32 to vector<40x1xf32>
    %15 = arith.divf %13, %14 : vector<40x1xf32>
    %16 = vector.broadcast %8 : vector<40x1xf32> to vector<40x32xf32>
    %17 = arith.subf %4, %16 : vector<40x32xf32>
    %cst_8 = arith.constant 9.99999974E-6 : f32
    %18 = vector.broadcast %cst_8 : f32 to vector<40x1xf32>
    %19 = arith.addf %15, %18 : vector<40x1xf32>
    %20 = math.rsqrt %19 : vector<40x1xf32>
    %21 = vector.broadcast %20 : vector<40x1xf32> to vector<40x32xf32>
    %22 = arith.mulf %17, %21 : vector<40x32xf32>
    %23 = vector.shape_cast %1 : vector<32xf32> to vector<1x32xf32>
    %24 = vector.broadcast %23 : vector<1x32xf32> to vector<40x32xf32>
    %25 = arith.mulf %22, %24 : vector<40x32xf32>
    %26 = vector.shape_cast %3 : vector<32xf32> to vector<1x32xf32>
    %27 = vector.broadcast %26 : vector<1x32xf32> to vector<40x32xf32>
    %28 = arith.addf %25, %27 : vector<40x32xf32>
    %c0_9 = arith.constant 0 : index
    %c0_10 = arith.constant 0 : index
    %29 = vector.load %arg2[%c0_9, %c0_10] : memref<56x32xf32, #tpu.memory_space<vmem>>, vector<56x32xf32>
    %cst_11 = arith.constant dense<0.000000e+00> : vector<56xf32>
    %30 = vector.multi_reduction <add>, %29, %cst_11 [1] : vector<56x32xf32> to vector<56xf32>
    %31 = vector.shape_cast %30 : vector<56xf32> to vector<56x1xf32>
    %cst_12 = arith.constant 3.200000e+01 : f32
    %32 = vector.broadcast %cst_12 : f32 to vector<56x1xf32>
    %33 = arith.divf %31, %32 : vector<56x1xf32>
    %34 = vector.broadcast %33 : vector<56x1xf32> to vector<56x32xf32>
    %35 = arith.subf %29, %34 : vector<56x32xf32>
    %36 = arith.mulf %35, %35 : vector<56x32xf32>
    %cst_13 = arith.constant dense<0.000000e+00> : vector<56xf32>
    %37 = vector.multi_reduction <add>, %36, %cst_13 [1] : vector<56x32xf32> to vector<56xf32>
    %38 = vector.shape_cast %37 : vector<56xf32> to vector<56x1xf32>
    %cst_14 = arith.constant 3.200000e+01 : f32
    %39 = vector.broadcast %cst_14 : f32 to vector<56x1xf32>
    %40 = arith.divf %38, %39 : vector<56x1xf32>
    %41 = vector.broadcast %33 : vector<56x1xf32> to vector<56x32xf32>
    %42 = arith.subf %29, %41 : vector<56x32xf32>
    %cst_15 = arith.constant 9.99999974E-6 : f32
    %43 = vector.broadcast %cst_15 : f32 to vector<56x1xf32>
    %44 = arith.addf %40, %43 : vector<56x1xf32>
    %45 = math.rsqrt %44 : vector<56x1xf32>
    %46 = vector.broadcast %45 : vector<56x1xf32> to vector<56x32xf32>
    %47 = arith.mulf %42, %46 : vector<56x32xf32>
    %48 = vector.shape_cast %1 : vector<32xf32> to vector<1x32xf32>
    %49 = vector.broadcast %48 : vector<1x32xf32> to vector<56x32xf32>
    %50 = arith.mulf %47, %49 : vector<56x32xf32>
    %51 = vector.shape_cast %3 : vector<32xf32> to vector<1x32xf32>
    %52 = vector.broadcast %51 : vector<1x32xf32> to vector<56x32xf32>
    %53 = arith.addf %50, %52 : vector<56x32xf32>
    %54 = arith.truncf %28 : vector<40x32xf32> to vector<40x32xbf16>
    %c0_16 = arith.constant 0 : index
    %c0_17 = arith.constant 0 : index
    %55 = vector.load %arg6[%c0_16, %c0_17] : memref<32x32xbf16, #tpu.memory_space<vmem>>, vector<32x32xbf16>
    %cst_18 = arith.constant dense<0.000000e+00> : vector<40x32xf32>
    %56 = tpu.matmul %54, %55, %cst_18 {dimension_numbers = #tpu.dot_dimension_numbers<[1], [0], [0], [1], [0, 0, 1, 1], [], []>} : vector<40x32xbf16>, vector<32x32xbf16>, vector<40x32xf32> -> vector<40x32xf32>
    %c0_19 = arith.constant 0 : index
    %c0_20 = arith.constant 0 : index
    %57 = vector.load %arg7[%c0_19, %c0_20] : memref<1x32xf32, #tpu.memory_space<vmem>>, vector<1x32xf32>
    %58 = vector.shape_cast %57 : vector<1x32xf32> to vector<32xf32>
    %59 = vector.shape_cast %58 : vector<32xf32> to vector<1x32xf32>
    %60 = vector.broadcast %59 : vector<1x32xf32> to vector<40x32xf32>
    %61 = arith.addf %56, %60 : vector<40x32xf32>
    %62 = arith.truncf %53 : vector<56x32xf32> to vector<56x32xbf16>
    %c0_21 = arith.constant 0 : index
    %c0_22 = arith.constant 0 : index
    %63 = vector.load %arg8[%c0_21, %c0_22] : memref<32x64xbf16, #tpu.memory_space<vmem>>, vector<32x64xbf16>
    %cst_23 = arith.constant dense<0.000000e+00> : vector<56x64xf32>
    %64 = tpu.matmul %62, %63, %cst_23 {dimension_numbers = #tpu.dot_dimension_numbers<[1], [0], [0], [1], [0, 0, 1, 1], [], []>} : vector<56x32xbf16>, vector<32x64xbf16>, vector<56x64xf32> -> vector<56x64xf32>
    %c0_24 = arith.constant 0 : index
    %c0_25 = arith.constant 0 : index
    %65 = vector.load %arg9[%c0_24, %c0_25] : memref<1x64xf32, #tpu.memory_space<vmem>>, vector<1x64xf32>
    %66 = vector.shape_cast %65 : vector<1x64xf32> to vector<64xf32>
    %67 = vector.shape_cast %66 : vector<64xf32> to vector<1x64xf32>
    %68 = vector.broadcast %67 : vector<1x64xf32> to vector<56x64xf32>
    %69 = arith.addf %64, %68 : vector<56x64xf32>
    %70 = arith.truncf %61 : vector<40x32xf32> to vector<40x32xbf16>
    %71 = vector.extract_strided_slice %69 {offsets = [0, 0], sizes = [56, 32], strides = [1, 1]} : vector<56x64xf32> to vector<56x32xf32>
    %72 = arith.truncf %71 : vector<56x32xf32> to vector<56x32xbf16>
    %73 = vector.extract_strided_slice %69 {offsets = [0, 32], sizes = [56, 32], strides = [1, 1]} : vector<56x64xf32> to vector<56x32xf32>
    %74 = arith.truncf %73 : vector<56x32xf32> to vector<56x32xbf16>
    %75 = vector.extract_strided_slice %70 {offsets = [0, 0], sizes = [40, 8], strides = [1, 1]} : vector<40x32xbf16> to vector<40x8xbf16>
    %76 = vector.extract_strided_slice %72 {offsets = [0, 0], sizes = [56, 8], strides = [1, 1]} : vector<56x32xbf16> to vector<56x8xbf16>
    %cst_26 = arith.constant dense<0.000000e+00> : vector<40x56xf32>
    %77 = tpu.matmul %75, %76, %cst_26 {dimension_numbers = #tpu.dot_dimension_numbers<[1], [1], [0], [0], [0, 0, 1, 0], [], []>} : vector<40x8xbf16>, vector<56x8xbf16>, vector<40x56xf32> -> vector<40x56xf32>
    %c0_27 = arith.constant 0 : index
    %c0_28 = arith.constant 0 : index
    %c0_29 = arith.constant 0 : index
    %78 = vector.load %arg3[%c0_27, %c0_28, %c0_29] : memref<4x40x56xf32, #tpu.memory_space<vmem>>, vector<1x40x56xf32>
    %79 = vector.shape_cast %78 : vector<1x40x56xf32> to vector<40x56xf32>
    %80 = arith.addf %77, %79 : vector<40x56xf32>
    %cst_30 = arith.constant dense<0xFF800000> : vector<40xf32>
    %81 = vector.multi_reduction <maximumf>, %80, %cst_30 [1] : vector<40x56xf32> to vector<40xf32>
    %82 = vector.shape_cast %81 : vector<40xf32> to vector<40x1xf32>
    %83 = vector.broadcast %82 : vector<40x1xf32> to vector<40x56xf32>
    %84 = arith.subf %80, %83 : vector<40x56xf32>
    %85 = math.exp %84 : vector<40x56xf32>
    %cst_31 = arith.constant dense<0.000000e+00> : vector<40xf32>
    %86 = vector.multi_reduction <add>, %85, %cst_31 [1] : vector<40x56xf32> to vector<40xf32>
    %87 = vector.shape_cast %86 : vector<40xf32> to vector<40x1xf32>
    %88 = tpu.reciprocal %87 {approx = true} : vector<40x1xf32> -> vector<40x1xf32>
    %89 = vector.broadcast %88 : vector<40x1xf32> to vector<40x56xf32>
    %90 = arith.mulf %85, %89 : vector<40x56xf32>
    %91 = arith.truncf %90 : vector<40x56xf32> to vector<40x56xbf16>
    %92 = vector.extract_strided_slice %74 {offsets = [0, 0], sizes = [56, 8], strides = [1, 1]} : vector<56x32xbf16> to vector<56x8xbf16>
    %cst_32 = arith.constant dense<0.000000e+00> : vector<40x8xf32>
    %93 = tpu.matmul %91, %92, %cst_32 {dimension_numbers = #tpu.dot_dimension_numbers<[1], [0], [0], [1], [0, 0, 1, 1], [], []>} : vector<40x56xbf16>, vector<56x8xbf16>, vector<40x8xf32> -> vector<40x8xf32>
    %c0_33 = arith.constant 0 : index
    %c0_34 = arith.constant 0 : index
    %94 = vector.load %arg13[%c0_33, %c0_34] : memref<40x32xf32, #tpu.memory_space<vmem>>, vector<40x8xf32>
    tpu.vector_store %arg13[%c0_33, %c0_34], %93 {strides = array<i32>} : memref<40x32xf32, #tpu.memory_space<vmem>>, vector<40x8xf32>,
    %95 = vector.extract_strided_slice %70 {offsets = [0, 8], sizes = [40, 8], strides = [1, 1]} : vector<40x32xbf16> to vector<40x8xbf16>
    %96 = vector.extract_strided_slice %72 {offsets = [0, 8], sizes = [56, 8], strides = [1, 1]} : vector<56x32xbf16> to vector<56x8xbf16>
    %cst_35 = arith.constant dense<0.000000e+00> : vector<40x56xf32>
    %97 = tpu.matmul %95, %96, %cst_35 {dimension_numbers = #tpu.dot_dimension_numbers<[1], [1], [0], [0], [0, 0, 1, 0], [], []>} : vector<40x8xbf16>, vector<56x8xbf16>, vector<40x56xf32> -> vector<40x56xf32>
    %c1 = arith.constant 1 : index
    %c0_36 = arith.constant 0 : index
    %c0_37 = arith.constant 0 : index
    %98 = vector.load %arg3[%c1, %c0_36, %c0_37] : memref<4x40x56xf32, #tpu.memory_space<vmem>>, vector<1x40x56xf32>
    %99 = vector.shape_cast %98 : vector<1x40x56xf32> to vector<40x56xf32>
    %100 = arith.addf %97, %99 : vector<40x56xf32>
    %cst_38 = arith.constant dense<0xFF800000> : vector<40xf32>
    %101 = vector.multi_reduction <maximumf>, %100, %cst_38 [1] : vector<40x56xf32> to vector<40xf32>
    %102 = vector.shape_cast %101 : vector<40xf32> to vector<40x1xf32>
    %103 = vector.broadcast %102 : vector<40x1xf32> to vector<40x56xf32>
    %104 = arith.subf %100, %103 : vector<40x56xf32>
    %105 = math.exp %104 : vector<40x56xf32>
    %cst_39 = arith.constant dense<0.000000e+00> : vector<40xf32>
    %106 = vector.multi_reduction <add>, %105, %cst_39 [1] : vector<40x56xf32> to vector<40xf32>
    %107 = vector.shape_cast %106 : vector<40xf32> to vector<40x1xf32>
    %108 = tpu.reciprocal %107 {approx = true} : vector<40x1xf32> -> vector<40x1xf32>
    %109 = vector.broadcast %108 : vector<40x1xf32> to vector<40x56xf32>
    %110 = arith.mulf %105, %109 : vector<40x56xf32>
    %111 = arith.truncf %110 : vector<40x56xf32> to vector<40x56xbf16>
    %112 = vector.extract_strided_slice %74 {offsets = [0, 8], sizes = [56, 8], strides = [1, 1]} : vector<56x32xbf16> to vector<56x8xbf16>
    %cst_40 = arith.constant dense<0.000000e+00> : vector<40x8xf32>
    %113 = tpu.matmul %111, %112, %cst_40 {dimension_numbers = #tpu.dot_dimension_numbers<[1], [0], [0], [1], [0, 0, 1, 1], [], []>} : vector<40x56xbf16>, vector<56x8xbf16>, vector<40x8xf32> -> vector<40x8xf32>
    %c0_41 = arith.constant 0 : index
    %c8 = arith.constant 8 : index
    %114 = vector.load %arg13[%c0_41, %c8] : memref<40x32xf32, #tpu.memory_space<vmem>>, vector<40x8xf32>
    tpu.vector_store %arg13[%c0_41, %c8], %113 {strides = array<i32>} : memref<40x32xf32, #tpu.memory_space<vmem>>, vector<40x8xf32>,
    %115 = vector.extract_strided_slice %70 {offsets = [0, 16], sizes = [40, 8], strides = [1, 1]} : vector<40x32xbf16> to vector<40x8xbf16>
    %116 = vector.extract_strided_slice %72 {offsets = [0, 16], sizes = [56, 8], strides = [1, 1]} : vector<56x32xbf16> to vector<56x8xbf16>
    %cst_42 = arith.constant dense<0.000000e+00> : vector<40x56xf32>
    %117 = tpu.matmul %115, %116, %cst_42 {dimension_numbers = #tpu.dot_dimension_numbers<[1], [1], [0], [0], [0, 0, 1, 0], [], []>} : vector<40x8xbf16>, vector<56x8xbf16>, vector<40x56xf32> -> vector<40x56xf32>
    %c2 = arith.constant 2 : index
    %c0_43 = arith.constant 0 : index
    %c0_44 = arith.constant 0 : index
    %118 = vector.load %arg3[%c2, %c0_43, %c0_44] : memref<4x40x56xf32, #tpu.memory_space<vmem>>, vector<1x40x56xf32>
    %119 = vector.shape_cast %118 : vector<1x40x56xf32> to vector<40x56xf32>
    %120 = arith.addf %117, %119 : vector<40x56xf32>
    %cst_45 = arith.constant dense<0xFF800000> : vector<40xf32>
    %121 = vector.multi_reduction <maximumf>, %120, %cst_45 [1] : vector<40x56xf32> to vector<40xf32>
    %122 = vector.shape_cast %121 : vector<40xf32> to vector<40x1xf32>
    %123 = vector.broadcast %122 : vector<40x1xf32> to vector<40x56xf32>
    %124 = arith.subf %120, %123 : vector<40x56xf32>
    %125 = math.exp %124 : vector<40x56xf32>
    %cst_46 = arith.constant dense<0.000000e+00> : vector<40xf32>
    %126 = vector.multi_reduction <add>, %125, %cst_46 [1] : vector<40x56xf32> to vector<40xf32>
    %127 = vector.shape_cast %126 : vector<40xf32> to vector<40x1xf32>
    %128 = tpu.reciprocal %127 {approx = true} : vector<40x1xf32> -> vector<40x1xf32>
    %129 = vector.broadcast %128 : vector<40x1xf32> to vector<40x56xf32>
    %130 = arith.mulf %125, %129 : vector<40x56xf32>
    %131 = arith.truncf %130 : vector<40x56xf32> to vector<40x56xbf16>
    %132 = vector.extract_strided_slice %74 {offsets = [0, 16], sizes = [56, 8], strides = [1, 1]} : vector<56x32xbf16> to vector<56x8xbf16>
    %cst_47 = arith.constant dense<0.000000e+00> : vector<40x8xf32>
    %133 = tpu.matmul %131, %132, %cst_47 {dimension_numbers = #tpu.dot_dimension_numbers<[1], [0], [0], [1], [0, 0, 1, 1], [], []>} : vector<40x56xbf16>, vector<56x8xbf16>, vector<40x8xf32> -> vector<40x8xf32>
    %c0_48 = arith.constant 0 : index
    %c16 = arith.constant 16 : index
    %134 = vector.load %arg13[%c0_48, %c16] : memref<40x32xf32, #tpu.memory_space<vmem>>, vector<40x8xf32>
    tpu.vector_store %arg13[%c0_48, %c16], %133 {strides = array<i32>} : memref<40x32xf32, #tpu.memory_space<vmem>>, vector<40x8xf32>,
    %135 = vector.extract_strided_slice %70 {offsets = [0, 24], sizes = [40, 8], strides = [1, 1]} : vector<40x32xbf16> to vector<40x8xbf16>
    %136 = vector.extract_strided_slice %72 {offsets = [0, 24], sizes = [56, 8], strides = [1, 1]} : vector<56x32xbf16> to vector<56x8xbf16>
    %cst_49 = arith.constant dense<0.000000e+00> : vector<40x56xf32>
    %137 = tpu.matmul %135, %136, %cst_49 {dimension_numbers = #tpu.dot_dimension_numbers<[1], [1], [0], [0], [0, 0, 1, 0], [], []>} : vector<40x8xbf16>, vector<56x8xbf16>, vector<40x56xf32> -> vector<40x56xf32>
    %c3 = arith.constant 3 : index
    %c0_50 = arith.constant 0 : index
    %c0_51 = arith.constant 0 : index
    %138 = vector.load %arg3[%c3, %c0_50, %c0_51] : memref<4x40x56xf32, #tpu.memory_space<vmem>>, vector<1x40x56xf32>
    %139 = vector.shape_cast %138 : vector<1x40x56xf32> to vector<40x56xf32>
    %140 = arith.addf %137, %139 : vector<40x56xf32>
    %cst_52 = arith.constant dense<0xFF800000> : vector<40xf32>
    %141 = vector.multi_reduction <maximumf>, %140, %cst_52 [1] : vector<40x56xf32> to vector<40xf32>
    %142 = vector.shape_cast %141 : vector<40xf32> to vector<40x1xf32>
    %143 = vector.broadcast %142 : vector<40x1xf32> to vector<40x56xf32>
    %144 = arith.subf %140, %143 : vector<40x56xf32>
    %145 = math.exp %144 : vector<40x56xf32>
    %cst_53 = arith.constant dense<0.000000e+00> : vector<40xf32>
    %146 = vector.multi_reduction <add>, %145, %cst_53 [1] : vector<40x56xf32> to vector<40xf32>
    %147 = vector.shape_cast %146 : vector<40xf32> to vector<40x1xf32>
    %148 = tpu.reciprocal %147 {approx = true} : vector<40x1xf32> -> vector<40x1xf32>
    %149 = vector.broadcast %148 : vector<40x1xf32> to vector<40x56xf32>
    %150 = arith.mulf %145, %149 : vector<40x56xf32>
    %151 = arith.truncf %150 : vector<40x56xf32> to vector<40x56xbf16>
    %152 = vector.extract_strided_slice %74 {offsets = [0, 24], sizes = [56, 8], strides = [1, 1]} : vector<56x32xbf16> to vector<56x8xbf16>
    %cst_54 = arith.constant dense<0.000000e+00> : vector<40x8xf32>
    %153 = tpu.matmul %151, %152, %cst_54 {dimension_numbers = #tpu.dot_dimension_numbers<[1], [0], [0], [1], [0, 0, 1, 1], [], []>} : vector<40x56xbf16>, vector<56x8xbf16>, vector<40x8xf32> -> vector<40x8xf32>
    %c0_55 = arith.constant 0 : index
    %c24 = arith.constant 24 : index
    %154 = vector.load %arg13[%c0_55, %c24] : memref<40x32xf32, #tpu.memory_space<vmem>>, vector<40x8xf32>
    tpu.vector_store %arg13[%c0_55, %c24], %153 {strides = array<i32>} : memref<40x32xf32, #tpu.memory_space<vmem>>, vector<40x8xf32>,
    %c0_56 = arith.constant 0 : index
    %c0_57 = arith.constant 0 : index
    %155 = vector.load %arg13[%c0_56, %c0_57] : memref<40x32xf32, #tpu.memory_space<vmem>>, vector<40x32xf32>
    %156 = arith.truncf %155 : vector<40x32xf32> to vector<40x32xbf16>
    %c0_58 = arith.constant 0 : index
    %c0_59 = arith.constant 0 : index
    %157 = vector.load %arg10[%c0_58, %c0_59] : memref<32x32xbf16, #tpu.memory_space<vmem>>, vector<32x32xbf16>
    %cst_60 = arith.constant dense<0.000000e+00> : vector<40x32xf32>
    %158 = tpu.matmul %156, %157, %cst_60 {dimension_numbers = #tpu.dot_dimension_numbers<[1], [0], [0], [1], [0, 0, 1, 1], [], []>} : vector<40x32xbf16>, vector<32x32xbf16>, vector<40x32xf32> -> vector<40x32xf32>
    %c0_61 = arith.constant 0 : index
    %c0_62 = arith.constant 0 : index
    %159 = vector.load %arg11[%c0_61, %c0_62] : memref<1x32xf32, #tpu.memory_space<vmem>>, vector<1x32xf32>
    %160 = vector.shape_cast %159 : vector<1x32xf32> to vector<32xf32>
    %161 = vector.shape_cast %160 : vector<32xf32> to vector<1x32xf32>
    %162 = vector.broadcast %161 : vector<1x32xf32> to vector<40x32xf32>
    %163 = arith.addf %158, %162 : vector<40x32xf32>
    %c0_63 = arith.constant 0 : index
    %c0_64 = arith.constant 0 : index
    %164 = vector.load %arg12[%c0_63, %c0_64] : memref<40x32xf32, #tpu.memory_space<vmem>>, vector<40x32xf32>
    tpu.vector_store %arg12[%c0_63, %c0_64], %163 {strides = array<i32>} : memref<40x32xf32, #tpu.memory_space<vmem>>, vector<40x32xf32>,
    return
  }
  func.func @transform_0(%arg0: i32) -> (i32, i32) {
    %c0_i32 = arith.constant 0 : i32
    %c0_i32_0 = arith.constant 0 : i32
    return %arg0, %c0_i32 : i32, i32
  }
  func.func @transform_1(%arg0: i32) -> (i32, i32) {
    %c0_i32 = arith.constant 0 : i32
    %c0_i32_0 = arith.constant 0 : i32
    return %arg0, %c0_i32 : i32, i32
  }
  func.func @transform_2(%arg0: i32) -> (i32, i32, i32) {
    %c0_i32 = arith.constant 0 : i32
    %c0_i32_0 = arith.constant 0 : i32
    %c0_i32_1 = arith.constant 0 : i32
    %c0_i32_2 = arith.constant 0 : i32
    return %c0_i32, %c0_i32_0, %c0_i32_1 : i32, i32, i32
  }
  func.func @transform_3(%arg0: i32) -> (i32, i32) {
    %c0_i32 = arith.constant 0 : i32
    %c0_i32_0 = arith.constant 0 : i32
    %c0_i32_1 = arith.constant 0 : i32
    return %c0_i32, %c0_i32_0 : i32, i32
  }
  func.func @transform_4(%arg0: i32) -> (i32, i32) {
    %c0_i32 = arith.constant 0 : i32
    %c0_i32_0 = arith.constant 0 : i32
    %c0_i32_1 = arith.constant 0 : i32
    return %c0_i32, %c0_i32_0 : i32, i32
  }
  func.func @transform_5(%arg0: i32) -> (i32, i32) {
    %c0_i32 = arith.constant 0 : i32
    %c0_i32_0 = arith.constant 0 : i32
    %c0_i32_1 = arith.constant 0 : i32
    return %c0_i32, %c0_i32_0 : i32, i32
  }
  func.func @transform_6(%arg0: i32) -> (i32, i32) {
    %c0_i32 = arith.constant 0 : i32
    %c0_i32_0 = arith.constant 0 : i32
    %c0_i32_1 = arith.constant 0 : i32
    return %c0_i32, %c0_i32_0 : i32, i32
  }
  func.func @transform_7(%arg0: i32) -> (i32, i32) {
    %c0_i32 = arith.constant 0 : i32
    %c0_i32_0 = arith.constant 0 : i32
    %c0_i32_1 = arith.constant 0 : i32
    return %c0_i32, %c0_i32_0 : i32, i32
  }
  func.func @transform_8(%arg0: i32) -> (i32, i32) {
    %c0_i32 = arith.constant 0 : i32
    %c0_i32_0 = arith.constant 0 : i32
    %c0_i32_1 = arith.constant 0 : i32
    return %c0_i32, %c0_i32_0 : i32, i32
  }
  func.func @transform_9(%arg0: i32) -> (i32, i32) {
    %c0_i32 = arith.constant 0 : i32
    %c0_i32_0 = arith.constant 0 : i32
    %c0_i32_1 = arith.constant 0 : i32
    return %c0_i32, %c0_i32_0 : i32, i32
  }
  func.func @transform_10(%arg0: i32) -> (i32, i32) {
    %c0_i32 = arith.constant 0 : i32
    %c0_i32_0 = arith.constant 0 : i32
    %c0_i32_1 = arith.constant 0 : i32
    return %c0_i32, %c0_i32_0 : i32, i32
  }
  func.func @transform_11(%arg0: i32) -> (i32, i32) {
    %c0_i32 = arith.constant 0 : i32
    %c0_i32_0 = arith.constant 0 : i32
    return %arg0, %c0_i32 : i32, i32
  }
}

</mosaic_0001>

<bundles_post_ra>
// kernel: tpu_custom_call.1
= control target key start
LH: loop header
LB: loop body
LE: loop exit
PB: predicated region body
PF: predicated region fallthrough
CT: control target
= control target key end

     0   :  { %s2569_s17 = smov 0   ;;  %s3216_s0 = inlined_call_operand.vmem [shape: f32[80,32], index: 0, kind: input, shape index: {}]   ;;  %s3217_s1 = inlined_call_operand.vmem [shape: f32[112,32], index: 1, kind: input, shape index: {}]   ;;  %s3218_s2 = inlined_call_operand.vmem [shape: f32[4,40,56], index: 2, kind: input, shape index: {}]   ;;  %s3219_s3 = inlined_call_operand.vmem [shape: f32[1,32], index: 3, kind: input, shape index: {}]   ;;  %s3220_s4 = inlined_call_operand.vmem [shape: f32[1,32], index: 4, kind: input, shape index: {}]   ;;  %s3221_s5 = inlined_call_operand.vmem [shape: bf16[32,32], index: 5, kind: input, shape index: {}]   ;;  %s3222_s6 = inlined_call_operand.vmem [shape: f32[1,32], index: 6, kind: input, shape index: {}]   ;;  %s3223_s7 = inlined_call_operand.vmem [shape: bf16[32,64], index: 7, kind: input, shape index: {}]   ;;  %s3224_s8 = inlined_call_operand.vmem [shape: f32[1,64], index: 8, kind: input, shape index: {}]   ;;  %s3225_s9 = inlined_call_operand.vmem [shape: bf16[32,32], index: 9, kind: input, shape index: {}]   ;;  %s3226_s10 = inlined_call_operand.vmem [shape: f32[1,32], index: 10, kind: input, shape index: {}]   ;;  %s3227_s11 = inlined_call_operand.vmem [shape: f32[80,32], index: 11, kind: output, shape index: {}]  }
   0x1 LB: > { %s2005_s18 = sadd.s32 4294967295, %s2495_s17   ;;  %p2009_p0 = scmp.ge.s32.totalorder %s2495_s17, 1  ;;  %s2495_s17 = sphi %s2569_s17, %s21_s17  }
   0x2   : > { %p349_p1 = scmp.lt.s32.totalorder %s2495_s17, 3 }
   0x4   : > { %p350_p2 = pnand %p2009_p0, %p349_p1 }
   0x5   : > { %s400_s19 = smul.u32 (!%p350_p2), 7, %s2005_s18  ;;  %s2499_s22 = smov (!%p350_p2), 96  }
   0x6   : > { %353 = sbr.rel (%p350_p2) target bundleno = 2877 (0xb3d), region = 64  ;;  %s2500_s23 = smov (!%p350_p2), 120  }
   0x7   : > { %s394_s20 = smul.u32 (!%p350_p2), 5, %s2005_s18  ;;  %p401_p3 = scmp.lt.s32.totalorder (!%p350_p2), %s400_s19, 13 }
   0x8   : > { %s2502_s26 = smov (!%p350_p2), 88   ;;  %s2503_s30 = smov (!%p350_p2), 80  }
   0x9   : > { %p395_p4 = scmp.lt.s32.totalorder (!%p350_p2), %s394_s20, 9  ;;  %s2506_s29 = smov (!%p350_p2), 8  }
   0xa   : > { %s2508_s15 = smov (!%p350_p2), 24  }
   0xb   : > { %s3229_s19 = smov (!%p401_p3, %s400_s19), 13  ;;  %s3231_s20 = smov (!%p395_p4, %s394_s20), 9  ;;  %vm420_vm0 = vcmask 261120   ;;  %vm2498_vm1 = vmmov 0   ;;  %vm827_vm2 = vcmask 64512   ;;  %vm905_vm3 = vcmask 457728  }
   0xc   : > { %s2011_s21 = sshll.u32 %s3229_s19, 3  ;;  %s2010_s25 = sshll.u32 %s3231_s20, 3  ;;  %vm988_vm4 = vcmask 1043456   ;;  %vm1310_vm5 = vcmask 130112   ;;  %vm1570_vm6 = vcmask 195712   ;;  %vm1830_vm7 = vcmask 261312  }
   0xd   : > { %s404_s24 = scalar_lea.vmem %s3217_s1, %s2011_s21  ;;  %s398_s28 = scalar_lea.vmem %s3216_s0, %s2010_s25 }
   0xe   : > { %v509_v0 = vld [vmem:[%s404_s24] sm:$0xff]  ;;  %v511_v1 = vld [vmem:[%s404_s24 + $0x10] sm:$0xff]  ;;  %v510_v2 = vld [vmem:[%s404_s24 + $0x8] sm:$0xff] }
   0xf   : > { %v516_v3 = vsel %vm420_vm0, %v509_v0, 0.0  ;;  %v522_v4 = vsel %vm420_vm0, %v511_v1, 0.0  ;;  %v512_v5 = vld [vmem:[%s404_s24 + $0x18] sm:$0xff]  ;;  %v519_v6 = vsel %vm420_vm0, %v510_v2, 0.0  ;;  %v513_v8 = vld [vmem:[%s404_s24 + $0x20] sm:$0xff]  ;;  %v514_v9 = vld [vmem:[%s404_s24 + $0x28] sm:$0xff] }
  0x10   : > { %517 = vadd.xlane.f32.xlu0 %v516_v3  ;;  %523 = vadd.xlane.f32.xlu1 %v522_v4  ;;  %v525_v7 = vsel %vm420_vm0, %v512_v5, 0.0  ;;  %v528_v10 = vsel %vm420_vm0, %v513_v8, 0.0  ;;  %v531_v11 = vsel %vm420_vm0, %v514_v9, 0.0  ;;  %v515_v12 = vld [vmem:[%s404_s24 + $0x30] sm:$0xff]  ;;  %v415_v13 = vld [vmem:[%s398_s28] sm:$0xff]  ;;  %v416_v16 = vld [vmem:[%s398_s28 + $0x8] sm:$0xff] }
  0x11   : > { %v534_v14 = vsel %vm420_vm0, %v515_v12, 0.0  ;;  %v421_v15 = vsel %vm420_vm0, %v415_v13, 0.0  ;;  %v417_v17 = vld [vmem:[%s398_s28 + $0x10] sm:$0xff]  ;;  %v424_v18 = vsel %vm420_vm0, %v416_v16, 0.0  ;;  %v2598_v20 = vld [vmem:[%s398_s28 + $0x18] sm:$0xff]  ;;  %v2600_v21 = vld [vmem:[%s398_s28 + $0x20] sm:$0xff] }
  0x12   : > { %v427_v19 = vsel %vm420_vm0, %v417_v17, 0.0  ;;  %v430_v22 = vsel %vm420_vm0, %v2598_v20, 0.0  ;;  %v433_v23 = vsel %vm420_vm0, %v2600_v21, 0.0  ;;  %s2501_s24 = smov 112   ;;  %s2505_s28 = smov 72  }
  0x14   : > { %520 = vadd.xlane.f32.xlu0 %v519_v6  ;;  %526 = vadd.xlane.f32.xlu1 %v525_v7 }
  0x18   : > { %529 = vadd.xlane.f32.xlu0 %v528_v10  ;;  %532 = vadd.xlane.f32.xlu1 %v531_v11 }
  0x1c   : > { %535 = vadd.xlane.f32.xlu0 %v534_v14  ;;  %422 = vadd.xlane.f32.xlu1 %v421_v15 }
  0x20   : > { %425 = vadd.xlane.f32.xlu0 %v424_v18  ;;  %428 = vadd.xlane.f32.xlu1 %v427_v19 }
  0x24   : > { %431 = vadd.xlane.f32.xlu0 %v430_v22  ;;  %434 = vadd.xlane.f32.xlu1 %v433_v23  ;;  %v2497_v22 = vmov 0.0   ;;  %v2381_v23 = vld [vmem:[%s3221_s5 + $0x8] sm:$0xff]  }
  0x25   : > { %2147 = vmatprep.subr.bf16.mxu0 %v2497_v22  ;;  %2151 = vmatprep.mubr.msk.bf16.mxu0 %vm2498_vm1, %v2497_v22 }
  0x26   : > { %2148 = vmatpush3.bf16.msra.mxu0 %v2381_v23 }
  0x27   : > { %2149 = vmatprep.subr.bf16.mxu0 %v2497_v22 }
  0x99   : > { %v518_v24 = vpop.xlane.xlu0 %517  ;;  %v524_v25 = vpop.xlane.xlu1 %523 }
  0x9a   : > { %v537_v26 = vmul.f32 0.03125, %v518_v24  ;;  %v539_v27 = vmul.f32 0.03125, %v524_v25  ;;  %v2382_v24 = vld [vmem:[%s3221_s5] sm:$0xff]  }
  0x9b   : > { %2150 = vmatpush3.bf16.msra.mxu0 %v2382_v24 }
  0x9c   : > { %v2606_v28 = vsub.f32 %v509_v0, %v537_v26  ;;  %v2608_v29 = vsub.f32 %v511_v1, %v539_v27  ;;  %2175 = vmatprep.subr.bf16.mxu0 %v2497_v22 }
  0x9d   : > { %v521_v30 = vpop.xlane.xlu0 %520  ;;  %v527_v31 = vpop.xlane.xlu1 %526 }
  0x9e   : > { %v538_v32 = vmul.f32 0.03125, %v521_v30  ;;  %v540_v33 = vmul.f32 0.03125, %v527_v31  ;;  %v551_v34 = vmul.f32 %v2606_v28, %v2606_v28  ;;  %v553_v35 = vmul.f32 %v2608_v29, %v2608_v29 }
  0xa0   : > { %v2614_v36 = vsub.f32 %v510_v2, %v538_v32  ;;  %v2616_v37 = vsub.f32 %v512_v5, %v540_v33  ;;  %v558_v38 = vsel %vm420_vm0, %v551_v34, 0.0  ;;  %v564_v41 = vsel %vm420_vm0, %v553_v35, 0.0 }
  0xa1   : > { %v530_v39 = vpop.xlane.xlu0 %529  ;;  %559 = vadd.xlane.f32.xlu0 %v558_v38  ;;  %v533_v40 = vpop.xlane.xlu1 %532 }
  0xa2   : > { %v541_v42 = vmul.f32 0.03125, %v530_v39  ;;  %v542_v43 = vmul.f32 0.03125, %v533_v40  ;;  %v552_v44 = vmul.f32 %v2614_v36, %v2614_v36  ;;  %v554_v45 = vmul.f32 %v2616_v37, %v2616_v37 }
  0xa4   : > { %v2624_v46 = vsub.f32 %v513_v8, %v541_v42  ;;  %v2626_v47 = vsub.f32 %v514_v9, %v542_v43  ;;  %v561_v48 = vsel %vm420_vm0, %v552_v44, 0.0  ;;  %v567_v50 = vsel %vm420_vm0, %v554_v45, 0.0 }
  0xa5   : > { %v536_v49 = vpop.xlane.xlu0 %535  ;;  %565 = vadd.xlane.f32.xlu0 %v564_v41  ;;  %562 = vadd.xlane.f32.xlu1 %v561_v48  ;;  %v423_v51 = vpop.xlane.xlu1 %422 }
  0xa6   : > { %v543_v52 = vmul.f32 0.03125, %v536_v49  ;;  %v555_v53 = vmul.f32 %v2624_v46, %v2624_v46  ;;  %v437_v54 = vmul.f32 0.03125, %v423_v51  ;;  %v556_v55 = vmul.f32 %v2626_v47, %v2626_v47 }
  0xa8   : > { %v2634_v56 = vsub.f32 %v515_v12, %v543_v52  ;;  %v570_v57 = vsel %vm420_vm0, %v555_v53, 0.0  ;;  %v2637_v58 = vsub.f32 %v415_v13, %v437_v54  ;;  %v573_v60 = vsel %vm420_vm0, %v556_v55, 0.0 }
  0xa9   : > { %571 = vadd.xlane.f32.xlu0 %v570_v57  ;;  %v426_v59 = vpop.xlane.xlu0 %425  ;;  %568 = vadd.xlane.f32.xlu1 %v567_v50  ;;  %v429_v61 = vpop.xlane.xlu1 %428 }
  0xaa   : > { %v438_v62 = vmul.f32 0.03125, %v426_v59  ;;  %v557_v63 = vmul.f32 %v2634_v56, %v2634_v56  ;;  %v439_v0 = vmul.f32 0.03125, %v429_v61  ;;  %v447_v1 = vmul.f32 %v2637_v58, %v2637_v58 }
  0xac   : > { %v2644_v2 = vsub.f32 %v416_v16, %v438_v62  ;;  %v576_v3 = vsel %vm420_vm0, %v557_v63, 0.0  ;;  %v2647_v4 = vsub.f32 %v417_v17, %v439_v0  ;;  %v452_v6 = vsel %vm420_vm0, %v447_v1, 0.0  ;;  %v2690_v0 = vld [vmem:[%s3219_s3] ss:$0 sm:$0xff] }
  0xad   : > { %577 = vadd.xlane.f32.xlu0 %v576_v3  ;;  %v432_v5 = vpop.xlane.xlu0 %431  ;;  %574 = vadd.xlane.f32.xlu1 %v573_v60  ;;  %v435_v7 = vpop.xlane.xlu1 %434 }
  0xae   : > { %v440_v8 = vmul.f32 0.03125, %v432_v5  ;;  %v448_v9 = vmul.f32 %v2644_v2, %v2644_v2  ;;  %v441_v10 = vmul.f32 0.03125, %v435_v7  ;;  %v449_v11 = vmul.f32 %v2647_v4, %v2647_v4 }
  0xb0   : > { %v2655_v12 = vsub.f32 %v2598_v20, %v440_v8  ;;  %v455_v13 = vsel %vm420_vm0, %v448_v9, 0.0  ;;  %v2659_v14 = vsub.f32 %v2600_v21, %v441_v10  ;;  %v458_v16 = vsel %vm420_vm0, %v449_v11, 0.0  ;;  %v2379_v20 = vld [vmem:[%s3223_s7 + $0x8] sm:$0xff]   ;;  %v2380_v21 = vld [vmem:[%s3223_s7] sm:$0xff]  }
  0xb1   : > { %456 = vadd.xlane.f32.xlu0 %v455_v13  ;;  %453 = vadd.xlane.f32.xlu1 %v452_v6 }
  0xb2   : > { %v450_v15 = vmul.f32 %v2655_v12, %v2655_v12  ;;  %v451_v17 = vmul.f32 %v2659_v14, %v2659_v14  ;;  %2163 = vmatprep.subr.bf16.mxu1 %v2379_v20 }
  0xb3   : > { %2164 = vmatpush3.bf16.msra.mxu1 %v2379_v20 }
  0xb4   : > { %v461_v18 = vsel %vm420_vm0, %v450_v15, 0.0  ;;  %v464_v19 = vsel %vm420_vm0, %v451_v17, 0.0  ;;  %2165 = vmatprep.subr.bf16.mxu1 %v2380_v21 }
  0xb5   : > { %462 = vadd.xlane.f32.xlu0 %v461_v18  ;;  %459 = vadd.xlane.f32.xlu1 %v458_v16 }
  0xb7   : > { %2166 = vmatpush3.bf16.msra.mxu1 %v2380_v21 }
  0xb8   : > { %2195 = vmatprep.subr.bf16.mxu1 %v2497_v22 }
  0xb9   : > { %465 = vadd.xlane.f32.xlu1 %v464_v19 }
 0x12a   : > { %v560_v25 = vpop.xlane.xlu0 %559 }
 0x12b   : > { %v579_v26 = vmul.f32 0.03125, %v560_v25 }
 0x12d   : > { %v586_v27 = vadd.f32 1e-05, %v579_v26 }
 0x12e   : > { %v566_v30 = vpop.xlane.xlu0 %565  ;;  %v563_v31 = vpop.xlane.xlu1 %562 }
 0x12f   : > { %2385 = vrsqrt.f32 %v586_v27  ;;  %v581_v32 = vmul.f32 0.03125, %v566_v30  ;;  %v580_v33 = vmul.f32 0.03125, %v563_v31 }
 0x131   : > { %v588_v34 = vadd.f32 1e-05, %v581_v32  ;;  %v587_v35 = vadd.f32 1e-05, %v580_v33 }
 0x132   : > { %v572_v38 = vpop.xlane.xlu0 %571  ;;  %v569_v39 = vpop.xlane.xlu1 %568 }
 0x133   : > { %2387 = vrsqrt.f32 %v588_v34  ;;  %v583_v40 = vmul.f32 0.03125, %v572_v38  ;;  %v582_v41 = vmul.f32 0.03125, %v569_v39 }
 0x134   : > { %2389 = vrsqrt.f32 %v587_v35 }
 0x135   : > { %v590_v42 = vadd.f32 1e-05, %v583_v40  ;;  %v589_v43 = vadd.f32 1e-05, %v582_v41 }
 0x136   : > { %v578_v44 = vpop.xlane.xlu0 %577  ;;  %v575_v45 = vpop.xlane.xlu1 %574 }
 0x137   : > { %2391 = vrsqrt.f32 %v590_v42  ;;  %v585_v48 = vmul.f32 0.03125, %v578_v44  ;;  %v584_v49 = vmul.f32 0.03125, %v575_v45 }
 0x138   : > { %2393 = vrsqrt.f32 %v589_v43 }
 0x139   : > { %v592_v50 = vadd.f32 1e-05, %v585_v48  ;;  %v591_v51 = vadd.f32 1e-05, %v584_v49 }
 0x13a   : > { %v457_v52 = vpop.xlane.xlu0 %456  ;;  %v454_v53 = vpop.xlane.xlu1 %453 }
 0x13b   : > { %2395 = vrsqrt.f32 %v592_v50  ;;  %v468_v54 = vmul.f32 0.03125, %v457_v52  ;;  %v467_v55 = vmul.f32 0.03125, %v454_v53 }
 0x13c   : > { %v2386_v57 = vpop.eup %2385  ;;  %2397 = vrsqrt.f32 %v591_v51 }
 0x13d   : > { %v473_v59 = vadd.f32 1e-05, %v468_v54  ;;  %v472_v60 = vadd.f32 1e-05, %v467_v55  ;;  %v600_v61 = vmul.f32 %v2386_v57, %v2606_v28  ;;  %v2696_v28 = vld [vmem:[%s3220_s4] ss:$0 sm:$0xff] }
 0x13e   : > { %v463_v62 = vpop.xlane.xlu0 %462  ;;  %v460_v63 = vpop.xlane.xlu1 %459 }
 0x13f   : > { %2399 = vrsqrt.f32 %v473_v59  ;;  %v470_v1 = vmul.f32 0.03125, %v463_v62  ;;  %v469_v3 = vmul.f32 0.03125, %v460_v63  ;;  %v607_v9 = vmul.f32 %v2690_v0, %v600_v61 }
 0x140   : > { %v2388_v5 = vpop.eup %2387  ;;  %2401 = vrsqrt.f32 %v472_v60 }
 0x141   : > { %v2390_v6 = vpop.eup %2389  ;;  %v475_v7 = vadd.f32 1e-05, %v470_v1  ;;  %v474_v8 = vadd.f32 1e-05, %v469_v3  ;;  %v602_v13 = vmul.f32 %v2388_v5, %v2608_v29  ;;  %v614_v20 = vadd.f32 %v2696_v28, %v607_v9 }
 0x142   : > { %v466_v10 = vpop.xlane.xlu1 %465  ;;  %v601_v11 = vmul.f32 %v2390_v6, %v2614_v36 }
 0x143   : > { %2403 = vrsqrt.f32 %v475_v7  ;;  %v471_v15 = vmul.f32 0.03125, %v466_v10  ;;  %v609_v24 = vmul.f32 %v2690_v0, %v602_v13 }
 0x144   : > { %v2392_v16 = vpop.eup %2391  ;;  %2405 = vrsqrt.f32 %v474_v8  ;;  %v608_v17 = vmul.f32 %v2690_v0, %v601_v11 }
 0x145   : > { %v2394_v18 = vpop.eup %2393  ;;  %v476_v19 = vadd.f32 1e-05, %v471_v15  ;;  %v604_v36 = vmul.f32 %v2392_v16, %v2624_v46  ;;  %v616_v31 = vadd.f32 %v2696_v28, %v609_v24 }
 0x146   : > { %v615_v21 = vadd.f32 %v2696_v28, %v608_v17  ;;  %v603_v23 = vmul.f32 %v2394_v18, %v2616_v37 }
 0x147   : > { %2407 = vrsqrt.f32 %v476_v19  ;;  %v611_v33 = vmul.f32 %v2690_v0, %v604_v36 }
 0x148   : > { %v2396_v25 = vpop.eup %2395  ;;  %v712_v29 = vpack.c.bf16 %v615_v21, %v614_v20  ;;  %v610_v26 = vmul.f32 %v2690_v0, %v603_v23 }
 0x149   : > { %v2398_v27 = vpop.eup %2397  ;;  %v606_v30 = vmul.f32 %v2396_v25, %v2634_v56  ;;  %v618_v56 = vadd.f32 %v2696_v28, %v611_v33 }
 0x14a   : > { %2167 = vmatprep.mubr.msk.bf16.mxu1 %vm420_vm0, %v712_v29  ;;  %v617_v32 = vadd.f32 %v2696_v28, %v610_v26  ;;  %v605_v37 = vmul.f32 %v2398_v27, %v2626_v47 }
 0x14b   : > { %v613_v38 = vmul.f32 %v2690_v0, %v606_v30 }
 0x14c   : > { %v2400_v34 = vpop.eup %2399  ;;  %v713_v46 = vpack.c.bf16 %v617_v32, %v616_v31  ;;  %v612_v35 = vmul.f32 %v2690_v0, %v605_v37 }
 0x14d   : > { %v2402_v39 = vpop.eup %2401  ;;  %v483_v40 = vmul.f32 %v2400_v34, %v2644_v2  ;;  %v620_v48 = vadd.f32 %v2696_v28, %v613_v38 }
 0x14e   : > { %2168 = vmatmul.mubr.msk.bf16.vlgmr.msra.gmra.mxu1 %vm420_vm0, %v713_v46  ;;  %v619_v41 = vadd.f32 %v2696_v28, %v612_v35  ;;  %v482_v42 = vmul.f32 %v2402_v39, %v2637_v58  ;;  %v2015_v39 = vld [vmem:[%s3222_s6] ss:$0 sm:$0xff] }
 0x14f   : > { %v494_v47 = vmul.f32 %v2690_v0, %v483_v40  ;;  %v715_v53 = vpack.c.bf16 %v620_v48, %v620_v48  ;;  %v822_v48 = vld [vmem:[%s3218_s2] sm:$0xff] }
 0x150   : > { %v2404_v43 = vpop.eup %2403  ;;  %v714_v44 = vpack.c.bf16 %v619_v41, %v618_v56  ;;  %v493_v45 = vmul.f32 %v2690_v0, %v482_v42 }
 0x151   : > { %v2406_v49 = vpop.eup %2405  ;;  %v505_v50 = vadd.f32 %v2696_v28, %v494_v47  ;;  %v485_v2 = vmul.f32 %v2404_v43, %v2655_v12 }
 0x152   : > { %2171 = vmatprep.mubr.msk.bf16.mxu1 %vm420_vm0, %v714_v44  ;;  %v504_v51 = vadd.f32 %v2696_v28, %v493_v45  ;;  %v484_v52 = vmul.f32 %v2406_v49, %v2647_v4 }
 0x153   : > { %v496_v55 = vmul.f32 %v2690_v0, %v485_v2 }
 0x154   : > { %v621_v58 = vpack.c.bf16 %v505_v50, %v504_v51  ;;  %v495_v54 = vmul.f32 %v2690_v0, %v484_v52  ;;  %v2408_v57 = vpop.eup %2407  ;;  %v823_v51 = vld [vmem:[%s3218_s2 + $0x8] sm:$0xff] }
 0x155   : > { %v507_v4 = vadd.f32 %v2696_v28, %v496_v55  ;;  %v486_v59 = vmul.f32 %v2408_v57, %v2659_v14  ;;  %v824_v55 = vld [vmem:[%s3218_s2 + $0x10] sm:$0xff] }
 0x156   : > { %2152 = vmatmul.mubr.msk.bf16.vlgmr.msra.gmra.mxu0 %vm420_vm0, %v621_v58  ;;  %2172 = vmatmul.mubr.msk.bf16.gmra.mxu1 %vm420_vm0, %v715_v53  ;;  %v506_v12 = vadd.f32 %v2696_v28, %v495_v54 }
 0x157   : > { %2155 = vmatprep.mubr.msk.bf16.mxu0 %vm2498_vm1, %v2497_v22  ;;  %2203 = vmatprep.mubr.msk.bf16.mxu1 %vm2498_vm1, %v2497_v22  ;;  %v497_v61 = vmul.f32 %v2690_v0, %v486_v59  ;;  %v2021_v0 = vld [vmem:[%s3224_s8] ss:$0 sm:$0xff] }
 0x158   : > { %v622_v60 = vpack.c.bf16 %v507_v4, %v506_v12 }
 0x159   : > { %v508_v62 = vadd.f32 %v2696_v28, %v497_v61 }
 0x15b   : > { %v623_v63 = vpack.c.bf16 %v508_v62, %v508_v62 }
 0x15e   : > { %2156 = vmatmul.mubr.msk.bf16.gmra.mxu0 %vm420_vm0, %v622_v60  ;;  %v825_v60 = vld [vmem:[%s3218_s2 + $0x18] sm:$0xff] }
 0x15f   : > { %2159 = vmatprep.mubr.msk.bf16.mxu0 %vm2498_vm1, %v2497_v22 }
 0x166   : > { %2160 = vmatmul.mubr.msk.bf16.gmra.mxu0 %vm420_vm0, %v623_v63 }
 0x167   : > { %2183 = vmatprep.mubr.msk.bf16.mxu0 %vm2498_vm1, %v2497_v22 }
 0x20e   : > { %v2169_v1 = vpop.f32.mrf.mxu1 }
 0x20f   : > { %v794_v26 = vadd.f32 %v2169_v1, %v2021_v0 }
 0x210   : > { %v785_v3 = vpop.f32.mrf.mxu1 }
 0x211   : > { %v786_v46 = vadd.f32 %v2021_v0, %v785_v3  ;;  %v826_v3 = vld [vmem:[%s3218_s2 + $0x20] sm:$0xff] }
 0x212   : > { %v2170_v5 = vpop.f32.mrf.mxu1 }
 0x213   : > { %v797_v36 = vadd.f32 %v2170_v5, %v2021_v0 }
 0x214   : > { %v788_v14 = vpop.f32.mrf.mxu1 }
 0x215   : > { %v2760_v30 = vpack.c.bf16 %v797_v36, %v794_v26  ;;  %v789_v37 = vadd.f32 %v2021_v0, %v788_v14 }
 0x216   : > { %v690_v6 = vpop.f32.mrf.mxu0  ;;  %v2173_v7 = vpop.f32.mrf.mxu1 }
 0x217   : > { %v810_v8 = vadd.f32 %v2173_v7, %v2021_v0  ;;  %v841_v33 = vsel %vm827_vm2, %v2760_v30, 0  ;;  %v2765_v35 = vpack.c.bf16 %v789_v37, %v786_v46  ;;  %v691_v56 = vadd.f32 %v2015_v39, %v690_v6 }
 0x218   : > { %v2153_v9 = vpop.f32.mrf.mxu0  ;;  %v801_v10 = vpop.f32.mrf.mxu1 }
 0x219   : > { %v2750_v28 = vpack.c.bf16 %v810_v8, %v810_v8  ;;  %v802_v18 = vadd.f32 %v2021_v0, %v801_v10  ;;  %v838_v38 = vsel %vm827_vm2, %v2765_v35, 0 }
 0x21a   : > { %v693_v11 = vpop.f32.mrf.mxu0  ;;  %v2174_v13 = vpop.f32.mrf.mxu1 }
 0x21b   : > { %v847_v15 = vsel %vm827_vm2, %v2750_v28, 0  ;;  %v694_v40 = vadd.f32 %v2015_v39, %v693_v11 }
 0x21c   : > { %v2154_v16 = vpop.f32.mrf.mxu0  ;;  %v804_v17 = vpop.f32.mrf.mxu1  ;;  %2176 = vmatpush3.bf16.xpose.msra.mxu0 %v847_v15 }
 0x21d   : > { %v805_v19 = vadd.f32 %v2021_v0, %v804_v17  ;;  %2177 = vmatprep.subr.bf16.mxu0 %v2497_v22  ;;  %v2773_v41 = vpack.c.bf16 %v694_v40, %v691_v56 }
 0x21e   : > { %v698_v20 = vpop.f32.mrf.mxu0 }
 0x21f   : > { %v2755_v21 = vpack.c.bf16 %v805_v19, %v802_v18  ;;  %v699_v47 = vadd.f32 %v2015_v39, %v698_v20 }
 0x220   : > { %v2157_v23 = vpop.f32.mrf.mxu0 }
 0x221   : > { %v844_v25 = vsel %vm827_vm2, %v2755_v21, 0 }
 0x222   : > { %v701_v24 = vpop.f32.mrf.mxu0 }
 0x223   : > { %v702_v42 = vadd.f32 %v2015_v39, %v701_v24 }
 0x224   : > { %v2158_v29 = vpop.f32.mrf.mxu0  ;;  %2178 = vmatpush3.bf16.xpose.msra.mxu0 %v844_v25 }
 0x225   : > { %2179 = vmatprep.subr.bf16.mxu0 %v2497_v22  ;;  %v2779_v43 = vpack.c.bf16 %v702_v42, %v699_v47 }
 0x226   : > { %v706_v27 = vpop.f32.mrf.mxu0 }
 0x227   : > { %v707_v44 = vadd.f32 %v2015_v39, %v706_v27 }
 0x228   : > { %v2161_v31 = vpop.f32.mrf.mxu0 }
 0x229   : > { %v2785_v45 = vpack.c.bf16 %v707_v44, %v707_v44 }
 0x22a   : > { %v709_v32 = vpop.f32.mrf.mxu0 }
 0x22c   : > { %v2162_v34 = vpop.f32.mrf.mxu0  ;;  %2180 = vmatpush3.bf16.xpose.msra.mxu0 %v841_v33 }
 0x22d   : > { %2181 = vmatprep.subr.bf16.mxu0 %v2497_v22 }
 0x234   : > { %2182 = vmatpush3.bf16.xpose.msra.mxu0 %v838_v38 }
 0x235   : > { %2235 = vmatprep.subr.bf16.mxu0 %v2497_v22 }
 0x23b   : > { %2184 = vmatmul.mubr.msk.bf16.vlgmr.msra.gmra.mxu0 %vm827_vm2, %v2773_v41 }
 0x23c   : > { %2187 = vmatprep.mubr.msk.bf16.mxu0 %vm2498_vm1, %v2497_v22 }
 0x243   : > { %2188 = vmatmul.mubr.msk.bf16.gmra.mxu0 %vm827_vm2, %v2779_v43 }
 0x244   : > { %2191 = vmatprep.mubr.msk.bf16.mxu0 %vm2498_vm1, %v2497_v22 }
 0x24b   : > { %2192 = vmatmul.mubr.msk.bf16.gmra.mxu0 %vm827_vm2, %v2785_v45 }
 0x24c   : > { %2243 = vmatprep.mubr.msk.bf16.mxu0 %vm2498_vm1, %v2497_v22 }
 0x2fb   : > { %v883_v49 = vpop.f32.mrf.mxu0 }
 0x2fc   : > { %v884_v50 = vadd.f32 %v883_v49, %v822_v48 }
 0x2fd   : > { %v2185_v2 = vpop.f32.mrf.mxu0 }
 0x2fe   : > { %v906_v52 = vsel %vm905_vm3, %v884_v50, -inf }
 0x2ff   : > { %907 = vmax.xlane.f32.xlu0 %v906_v52  ;;  %v886_v58 = vpop.f32.mrf.mxu0 }
 0x300   : > { %v887_v53 = vadd.f32 %v886_v58, %v823_v51 }
 0x301   : > { %v2186_v54 = vpop.f32.mrf.mxu0 }
 0x302   : > { %v909_v57 = vsel %vm905_vm3, %v887_v53, -inf }
 0x303   : > { %910 = vmax.xlane.f32.xlu1 %v909_v57  ;;  %v891_v12 = vpop.f32.mrf.mxu0 }
 0x304   : > { %v892_v4 = vadd.f32 %v891_v12, %v824_v55 }
 0x305   : > { %v2189_v59 = vpop.f32.mrf.mxu0 }
 0x306   : > { %v912_v61 = vsel %vm905_vm3, %v892_v4, -inf }
 0x307   : > { %913 = vmax.xlane.f32.xlu0 %v912_v61  ;;  %v894_v62 = vpop.f32.mrf.mxu0 }
 0x308   : > { %v895_v63 = vadd.f32 %v894_v62, %v825_v60 }
 0x309   : > { %v2190_v1 = vpop.f32.mrf.mxu0 }
 0x30a   : > { %v915_v5 = vsel %vm905_vm3, %v895_v63, -inf }
 0x30b   : > { %916 = vmax.xlane.f32.xlu1 %v915_v5  ;;  %v899_v14 = vpop.f32.mrf.mxu0 }
 0x30c   : > { %v900_v0 = vadd.f32 %v899_v14, %v826_v3 }
 0x30d   : > { %v2193_v6 = vpop.f32.mrf.mxu0 }
 0x30e   : > { %v918_v7 = vsel %vm905_vm3, %v900_v0, -inf }
 0x30f   : > { %919 = vmax.xlane.f32.xlu0 %v918_v7  ;;  %v902_v8 = vpop.f32.mrf.mxu0 }
 0x311   : > { %v2194_v9 = vpop.f32.mrf.mxu0 }
 0x31c   : > { %974 = vrot.lane.b32.xlu1 %v2750_v28, %s2499_s22 }
 0x325   : > { %972 = vrot.lane.b32.xlu0 %v2755_v21, %s2499_s22 }
 0x388   : > { %v908_v10 = vpop.xlane.xlu0 %907 }
 0x389   : > { %v921_v11 = vsub.f32 %v884_v50, %v908_v10 }
 0x38b   : > { %v926_v13 = vmul.f32 1.442695, %v921_v11 }
 0x38c   : > { %v911_v15 = vpop.xlane.xlu1 %910 }
 0x38d   : > { %2409 = vpow2.f32 %v926_v13  ;;  %v922_v16 = vsub.f32 %v887_v53, %v911_v15 }
 0x38f   : > { %v928_v17 = vmul.f32 1.442695, %v922_v16 }
 0x390   : > { %v914_v18 = vpop.xlane.xlu0 %913 }
 0x391   : > { %2411 = vpow2.f32 %v928_v17  ;;  %v923_v19 = vsub.f32 %v892_v4, %v914_v18 }
 0x393   : > { %v930_v20 = vmul.f32 1.442695, %v923_v19 }
 0x394   : > { %v917_v23 = vpop.xlane.xlu1 %916 }
 0x395   : > { %2413 = vpow2.f32 %v930_v20  ;;  %v924_v24 = vsub.f32 %v895_v63, %v917_v23 }
 0x397   : > { %v932_v36 = vmul.f32 1.442695, %v924_v24 }
 0x398   : > { %v975_v25 = vpop.permute.xlu1 %974  ;;  %v920_v29 = vpop.xlane.xlu0 %919 }
 0x399   : > { %2415 = vpow2.f32 %v932_v36  ;;  %v990_v26 = vsel %vm988_vm4, %v975_v25, 0  ;;  %v925_v40 = vsub.f32 %v900_v0, %v920_v29 }
 0x39a   : > { %v2410_v27 = vpop.eup %2409  ;;  %2196 = vmatpush3.bf16.msra.mxu1 %v990_v26 }
 0x39b   : > { %v936_v31 = vsel %vm905_vm3, %v2410_v27, 0.0  ;;  %2197 = vmatprep.subr.bf16.mxu1 %v2497_v22  ;;  %v934_v56 = vmul.f32 1.442695, %v925_v40 }
 0x39c   : > { %937 = vadd.xlane.f32.xlu1 %v936_v31  ;;  %v973_v32 = vpop.permute.xlu0 %972 }
 0x39d   : > { %2417 = vpow2.f32 %v934_v56 }
 0x39e   : > { %v2412_v37 = vpop.eup %2411  ;;  %2198 = vmatpush3.bf16.msra.mxu1 %v973_v32 }
 0x39f   : > { %v939_v33 = vsel %vm905_vm3, %v2412_v37, 0.0  ;;  %2199 = vmatprep.subr.bf16.mxu1 %v2497_v22 }
 0x3a0   : > { %940 = vadd.xlane.f32.xlu0 %v939_v33 }
 0x3a2   : > { %v2414_v34 = vpop.eup %2413 }
 0x3a3   : > { %v942_v46 = vsel %vm905_vm3, %v2414_v34, 0.0 }
 0x3a4   : > { %943 = vadd.xlane.f32.xlu0 %v942_v46 }
 0x3a6   : > { %v2416_v38 = vpop.eup %2415 }
 0x3a7   : > { %v945_v39 = vsel %vm905_vm3, %v2416_v38, 0.0 }
 0x3a8   : > { %946 = vadd.xlane.f32.xlu0 %v945_v39 }
 0x3aa   : > { %v2829_v42 = vpop.eup %2417 }
 0x3ab   : > { %v948_v47 = vsel %vm905_vm3, %v2829_v42, 0.0 }
 0x3ad   : > { %970 = vrot.lane.b32.xlu1 %v2760_v30, %s2499_s22 }
 0x3be   : > { %968 = vrot.lane.b32.xlu0 %v2765_v35, %s2499_s22  ;;  %s410_s22 = scalar_lea.vmem %s3227_s11, %s2010_s25 }
 0x3c2   : > { %1074 = vrot.lane.b32.xlu0 %v2750_v28, %s2500_s23 }
 0x3c6   : > { %1072 = vrot.lane.b32.xlu0 %v2755_v21, %s2500_s23 }
 0x3ca   : > { %1070 = vrot.lane.b32.xlu0 %v2760_v30, %s2500_s23 }
 0x3ce   : > { %1068 = vrot.lane.b32.xlu0 %v2765_v35, %s2500_s23 }
 0x3d1   : > { %949 = vadd.xlane.f32.xlu1 %v948_v47 }
 0x3d2   : > { %1334 = vrot.lane.b32.xlu0 %v2750_v28, %s2501_s24 }
 0x3d6   : > { %1332 = vrot.lane.b32.xlu0 %v2755_v21, %s2501_s24 }
 0x3da   : > { %1064 = vrot.lane.b32.xlu0 %v2779_v43, %s2500_s23 }
 0x3de   : > { %1330 = vrot.lane.b32.xlu0 %v2760_v30, %s2501_s24 }
 0x3e2   : > { %1066 = vrot.lane.b32.xlu0 %v2785_v45, %s2500_s23  ;;  %1062 = vrot.lane.b32.xlu1 %v2773_v41, %s2500_s23 }
 0x3e6   : > { %1328 = vrot.lane.b32.xlu0 %v2765_v35, %s2501_s24  ;;  %1322 = vrot.lane.b32.xlu1 %v2773_v41, %s2501_s24 }
 0x3ea   : > { %1324 = vrot.lane.b32.xlu0 %v2779_v43, %s2501_s24  ;;  %1326 = vrot.lane.b32.xlu1 %v2785_v45, %s2501_s24 }
 0x3ee   : > { %1215 = vrot.lane.b32.xlu0 %v2755_v21, %s2502_s26  ;;  %1217 = vrot.lane.b32.xlu1 %v2750_v28, %s2502_s26 }
 0x425   : > { %v938_v44 = vpop.xlane.xlu1 %937 }
 0x426   : > { %2419 = vrcp.f32 %v938_v44 }
 0x429   : > { %v971_v48 = vpop.permute.xlu1 %970  ;;  %v941_v49 = vpop.xlane.xlu0 %940 }
 0x42a   : > { %2421 = vrcp.f32 %v941_v49  ;;  %2200 = vmatpush3.bf16.msra.mxu1 %v971_v48  ;;  %v2034_v48 = vld [vmem:[%s3218_s2 + $0x28] sm:$0xff] }
 0x42b   : > { %2201 = vmatprep.subr.bf16.mxu1 %v2497_v22 }
 0x42d   : > { %v944_v50 = vpop.xlane.xlu0 %943 }
 0x42e   : > { %2423 = vrcp.f32 %v944_v50 }
 0x431   : > { %v947_v2 = vpop.xlane.xlu0 %946 }
 0x432   : > { %2425 = vrcp.f32 %v947_v2 }
 0x433   : > { %v2420_v51 = vpop.eup %2419 }
 0x434   : > { %v956_v53 = vmul.f32 %v2420_v51, %v2410_v27  ;;  %v2035_v51 = vld [vmem:[%s3218_s2 + $0x30] sm:$0xff] }
 0x435   : > { %v969_v52 = vpop.permute.xlu0 %968 }
 0x436   : > { %2202 = vmatpush3.bf16.msra.mxu1 %v969_v52 }
 0x437   : > { %v2422_v58 = vpop.eup %2421  ;;  %2215 = vmatprep.subr.bf16.mxu1 %v2497_v22 }
 0x438   : > { %v957_v54 = vmul.f32 %v2422_v58, %v2412_v37 }
 0x439   : > { %v1075_v55 = vpop.permute.xlu0 %1074 }
 0x43a   : > { %v1095_v57 = vsel %vm827_vm2, %v1075_v55, 0  ;;  %v961_v12 = vpack.c.bf16 %v957_v54, %v956_v53  ;;  %v2036_v55 = vld [vmem:[%s3218_s2 + $0x38] sm:$0xff] }
 0x43b   : > { %v2424_v4 = vpop.eup %2423 }
 0x43c   : > { %2204 = vmatmul.mubr.msk.bf16.vlgmr.msra.gmra.mxu1 %vm905_vm3, %v961_v12  ;;  %v958_v61 = vmul.f32 %v2424_v4, %v2414_v34 }
 0x43d   : > { %2216 = vmatpush3.bf16.xpose.msra.mxu1 %v1095_v57  ;;  %v1073_v59 = vpop.permute.xlu0 %1072  ;;  %2207 = vmatprep.mubr.msk.bf16.mxu1 %vm2498_vm1, %v2497_v22 }
 0x43e   : > { %2217 = vmatprep.subr.bf16.mxu1 %v2497_v22  ;;  %v1092_v3 = vsel %vm827_vm2, %v1073_v59, 0 }
 0x43f   : > { %v2426_v60 = vpop.eup %2425 }
 0x440   : > { %v959_v62 = vmul.f32 %v2426_v60, %v2416_v38  ;;  %v2037_v60 = vld [vmem:[%s3218_s2 + $0x40] sm:$0xff] }
 0x441   : > { %v1071_v63 = vpop.permute.xlu0 %1070 }
 0x442   : > { %v962_v1 = vpack.c.bf16 %v959_v62, %v958_v61  ;;  %v1089_v0 = vsel %vm827_vm2, %v1071_v63, 0 }
 0x444   : > { %2208 = vmatmul.mubr.msk.bf16.gmra.mxu1 %vm905_vm3, %v962_v1 }
 0x445   : > { %2218 = vmatpush3.bf16.xpose.msra.mxu1 %v1092_v3  ;;  %v1069_v5 = vpop.permute.xlu0 %1068  ;;  %2211 = vmatprep.mubr.msk.bf16.mxu1 %vm2498_vm1, %v2497_v22 }
 0x446   : > { %2219 = vmatprep.subr.bf16.mxu1 %v2497_v22  ;;  %v1086_v8 = vsel %vm827_vm2, %v1069_v5, 0 }
 0x449   : > { %v1335_v14 = vpop.permute.xlu0 %1334 }
 0x44a   : > { %v1355_v29 = vsel %vm827_vm2, %v1335_v14, 0 }
 0x44d   : > { %2220 = vmatpush3.bf16.xpose.msra.mxu1 %v1089_v0  ;;  %v1333_v6 = vpop.permute.xlu0 %1332 }
 0x44e   : > { %2221 = vmatprep.subr.bf16.mxu1 %v2497_v22  ;;  %v1352_v26 = vsel %vm827_vm2, %v1333_v6, 0 }
 0x451   : > { %v1065_v7 = vpop.permute.xlu0 %1064 }
 0x455   : > { %2222 = vmatpush3.bf16.xpose.msra.mxu1 %v1086_v8  ;;  %v1331_v9 = vpop.permute.xlu0 %1330 }
 0x456   : > { %2255 = vmatprep.subr.bf16.mxu1 %v2497_v22  ;;  %v1349_v27 = vsel %vm827_vm2, %v1331_v9, 0 }
 0x459   : > { %v1067_v11 = vpop.permute.xlu0 %1066 }
 0x45a   : > { %v950_v10 = vpop.xlane.xlu1 %949 }
 0x45b   : > { %2427 = vrcp.f32 %v950_v10 }
 0x45d   : > { %v1329_v16 = vpop.permute.xlu0 %1328 }
 0x45e   : > { %v1063_v13 = vpop.permute.xlu1 %1062  ;;  %v1346_v31 = vsel %vm827_vm2, %v1329_v16, 0  ;;  %v2047_v16 = vld [vmem:[%s3218_s2 + $0x60] sm:$0xff] }
 0x461   : > { %v1325_v19 = vpop.permute.xlu0 %1324 }
 0x462   : > { %v1323_v15 = vpop.permute.xlu1 %1322 }
 0x465   : > { %v1216_v25 = vpop.permute.xlu0 %1215 }
 0x466   : > { %v1327_v17 = vpop.permute.xlu1 %1326 }
 0x468   : > { %v2428_v18 = vpop.eup %2427 }
 0x469   : > { %v960_v20 = vmul.f32 %v2428_v18, %v2829_v42 }
 0x46a   : > { %v1218_v23 = vpop.permute.xlu1 %1217 }
 0x46b   : > { %v1232_v24 = vsel %vm988_vm4, %v1218_v23, 0  ;;  %v963_v36 = vpack.c.bf16 %v960_v20, %v960_v20 }
 0x46c   : > { %2236 = vmatpush3.bf16.msra.mxu0 %v1232_v24 }
 0x46d   : > { %2212 = vmatmul.mubr.msk.bf16.gmra.mxu1 %vm905_vm3, %v963_v36  ;;  %2237 = vmatprep.subr.bf16.mxu0 %v2497_v22 }
 0x46e   : > { %2223 = vmatprep.mubr.msk.bf16.mxu1 %vm2498_vm1, %v2497_v22 }
 0x470   : > { %2238 = vmatpush3.bf16.msra.mxu0 %v1216_v25 }
 0x471   : > { %2239 = vmatprep.subr.bf16.mxu0 %v2497_v22 }
 0x475   : > { %2224 = vmatmul.mubr.msk.bf16.vlgmr.msra.gmra.mxu1 %vm827_vm2, %v1063_v13 }
 0x476   : > { %2256 = vmatpush3.bf16.xpose.msra.mxu1 %v1355_v29  ;;  %2227 = vmatprep.mubr.msk.bf16.mxu1 %vm2498_vm1, %v2497_v22 }
 0x477   : > { %2257 = vmatprep.subr.bf16.mxu1 %v2497_v22 }
 0x47d   : > { %2228 = vmatmul.mubr.msk.bf16.gmra.mxu1 %vm827_vm2, %v1065_v7  ;;  %v2045_v7 = vld [vmem:[%s3218_s2 + $0x50] sm:$0xff] }
 0x47e   : > { %2258 = vmatpush3.bf16.xpose.msra.mxu1 %v1352_v26  ;;  %2231 = vmatprep.mubr.msk.bf16.mxu1 %vm2498_vm1, %v2497_v22  ;;  %v2038_v26 = vld [vmem:[%s3218_s2 + $0x48] sm:$0xff] }
 0x47f   : > { %2259 = vmatprep.subr.bf16.mxu1 %v2497_v22 }
 0x485   : > { %2232 = vmatmul.mubr.msk.bf16.gmra.mxu1 %vm827_vm2, %v1067_v11 }
 0x486   : > { %2260 = vmatpush3.bf16.xpose.msra.mxu1 %v1349_v27  ;;  %2263 = vmatprep.mubr.msk.bf16.mxu1 %vm2498_vm1, %v2497_v22 }
 0x487   : > { %2261 = vmatprep.subr.bf16.mxu1 %v2497_v22 }
 0x48e   : > { %2262 = vmatpush3.bf16.xpose.msra.mxu1 %v1346_v31 }
 0x48f   : > { %2351 = vmatprep.subr.bf16.mxu1 %v2497_v22 }
 0x495   : > { %2264 = vmatmul.mubr.msk.bf16.vlgmr.msra.gmra.mxu1 %vm827_vm2, %v1323_v15 }
 0x496   : > { %2267 = vmatprep.mubr.msk.bf16.mxu1 %vm2498_vm1, %v2497_v22 }
 0x49d   : > { %2268 = vmatmul.mubr.msk.bf16.gmra.mxu1 %vm827_vm2, %v1325_v19 }
 0x49e   : > { %2271 = vmatprep.mubr.msk.bf16.mxu1 %vm2498_vm1, %v2497_v22 }
 0x4a5   : > { %2272 = vmatmul.mubr.msk.bf16.gmra.mxu1 %vm827_vm2, %v1327_v17 }
 0x4a6   : > { %2327 = vmatprep.mubr.msk.bf16.mxu1 %vm2498_vm1, %v2497_v22 }
 0x4fc   : > { %v1026_v32 = vpop.f32.mrf.mxu1 }
 0x4fd   : > { %1048 = vst.msk [vmem:[#allocation2] sm:$0xff] %vm827_vm2, %v1026_v32  ;;  %v2046_v32 = vld [vmem:[%s3218_s2 + $0x58] sm:$0xff] }
 0x4fe   : > { %v2205_v37 = vpop.f32.mrf.mxu1 }
 0x500   : > { %v1029_v33 = vpop.f32.mrf.mxu1 }
 0x501   : > { %1049 = vst.msk [vmem:[#allocation2 + $0x8] sm:$0xff] %vm827_vm2, %v1029_v33 }
 0x502   : > { %v2206_v34 = vpop.f32.mrf.mxu1 }
 0x503   : > { %v2048_v34 = vld [vmem:[%s3218_s2 + $0x68] sm:$0xff] }
 0x504   : > { %v1034_v46 = vpop.f32.mrf.mxu1 }
 0x505   : > { %1050 = vst.msk [vmem:[#allocation2 + $0x10] sm:$0xff] %vm827_vm2, %v1034_v46 }
 0x506   : > { %v2209_v38 = vpop.f32.mrf.mxu1 }
 0x508   : > { %v1037_v39 = vpop.f32.mrf.mxu1 }
 0x509   : > { %1051 = vst.msk [vmem:[#allocation2 + $0x18] sm:$0xff] %vm827_vm2, %v1037_v39 }
 0x50a   : > { %v2210_v40 = vpop.f32.mrf.mxu1 }
 0x50b   : > { %v2049_v40 = vld [vmem:[%s3218_s2 + $0x70] sm:$0xff] }
 0x52d   : > { %v1042_v56 = vpop.f32.mrf.mxu1 }
 0x52e   : > { %1052 = vst.msk [vmem:[#allocation2 + $0x20] sm:$0xff] %vm827_vm2, %v1042_v56 }
 0x52f   : > { %v2213_v42 = vpop.f32.mrf.mxu1 }
 0x531   : > { %v1045_v47 = vpop.f32.mrf.mxu1 }
 0x533   : > { %v2214_v44 = vpop.f32.mrf.mxu1 }
 0x535   : > { %v1131_v49 = vpop.f32.mrf.mxu1 }
 0x536   : > { %v2905_v50 = vadd.f32 %v2034_v48, %v1131_v49 }
 0x537   : > { %v2225_v2 = vpop.f32.mrf.mxu1 }
 0x538   : > { %v1153_v52 = vsel %vm905_vm3, %v2905_v50, -inf }
 0x539   : > { %1154 = vmax.xlane.f32.xlu0 %v1153_v52  ;;  %v1134_v58 = vpop.f32.mrf.mxu1 }
 0x53a   : > { %v2912_v53 = vadd.f32 %v2035_v51, %v1134_v58 }
 0x53b   : > { %v2226_v54 = vpop.f32.mrf.mxu1 }
 0x53c   : > { %v1156_v57 = vsel %vm905_vm3, %v2912_v53, -inf }
 0x53d   : > { %1157 = vmax.xlane.f32.xlu1 %v1156_v57  ;;  %v1139_v12 = vpop.f32.mrf.mxu1 }
 0x53e   : > { %v2919_v4 = vadd.f32 %v2036_v55, %v1139_v12 }
 0x53f   : > { %v2229_v59 = vpop.f32.mrf.mxu1 }
 0x540   : > { %v1159_v61 = vsel %vm905_vm3, %v2919_v4, -inf }
 0x541   : > { %1160 = vmax.xlane.f32.xlu0 %v1159_v61  ;;  %v1142_v62 = vpop.f32.mrf.mxu1 }
 0x542   : > { %v2926_v63 = vadd.f32 %v2037_v60, %v1142_v62 }
 0x543   : > { %v2230_v1 = vpop.f32.mrf.mxu1 }
 0x544   : > { %v1162_v3 = vsel %vm905_vm3, %v2926_v63, -inf }
 0x545   : > { %1163 = vmax.xlane.f32.xlu0 %v1162_v3  ;;  %v1147_v5 = vpop.f32.mrf.mxu1 }
 0x546   : > { %v2949_v31 = vadd.f32 %v2038_v26, %v1147_v5 }
 0x547   : > { %v2233_v14 = vpop.f32.mrf.mxu1 }
 0x548   : > { %v1165_v33 = vsel %vm905_vm3, %v2949_v31, -inf }
 0x549   : > { %v1150_v0 = vpop.f32.mrf.mxu1 }
 0x54b   : > { %v2234_v6 = vpop.f32.mrf.mxu1 }
 0x54e   : > { %1213 = vrot.lane.b32.xlu1 %v2760_v30, %s2502_s26 }
 0x555   : > { %v1391_v8 = vpop.f32.mrf.mxu1 }
 0x556   : > { %v2935_v9 = vadd.f32 %v2045_v7, %v1391_v8 }
 0x557   : > { %v2265_v10 = vpop.f32.mrf.mxu1 }
 0x558   : > { %v1413_v11 = vsel %vm905_vm3, %v2935_v9, -inf }
 0x559   : > { %1414 = vmax.xlane.f32.xlu0 %v1413_v11  ;;  %v1394_v13 = vpop.f32.mrf.mxu1 }
 0x55a   : > { %v2954_v37 = vadd.f32 %v2046_v32, %v1394_v13 }
 0x55b   : > { %v2266_v15 = vpop.f32.mrf.mxu1 }
 0x55c   : > { %v1416_v38 = vsel %vm905_vm3, %v2954_v37, -inf }
 0x55d   : > { %v1399_v17 = vpop.f32.mrf.mxu1 }
 0x55e   : > { %v2942_v18 = vadd.f32 %v2047_v16, %v1399_v17 }
 0x55f   : > { %v2269_v19 = vpop.f32.mrf.mxu1 }
 0x560   : > { %v1419_v20 = vsel %vm905_vm3, %v2942_v18, -inf }
 0x561   : > { %1420 = vmax.xlane.f32.xlu0 %v1419_v20  ;;  %v1402_v23 = vpop.f32.mrf.mxu1 }
 0x562   : > { %v2961_v46 = vadd.f32 %v2048_v34, %v1402_v23 }
 0x563   : > { %v2270_v24 = vpop.f32.mrf.mxu1 }
 0x564   : > { %v1422_v39 = vsel %vm905_vm3, %v2961_v46, -inf }
 0x565   : > { %v1407_v36 = vpop.f32.mrf.mxu1 }
 0x566   : > { %v2974_v56 = vadd.f32 %v2049_v40, %v1407_v36 }
 0x567   : > { %v2273_v25 = vpop.f32.mrf.mxu1 }
 0x568   : > { %v1425_v42 = vsel %vm905_vm3, %v2974_v56, -inf }
 0x569   : > { %v1410_v29 = vpop.f32.mrf.mxu1 }
 0x56b   : > { %v2274_v27 = vpop.f32.mrf.mxu1 }
 0x572   : > { %1166 = vmax.xlane.f32.xlu1 %v1165_v33 }
 0x576   : > { %1417 = vmax.xlane.f32.xlu1 %v1416_v38 }
 0x577   : > { %1477 = vrot.lane.b32.xlu0 %v2750_v28, %s2503_s30 }
 0x57a   : > { %1423 = vmax.xlane.f32.xlu1 %v1422_v39 }
 0x58b   : > { %1211 = vrot.lane.b32.xlu1 %v2765_v35, %s2502_s26  ;;  %s2504_s26 = smov 104  }
 0x596   : > { %1426 = vmax.xlane.f32.xlu0 %v1425_v42 }
 0x5c2   : > { %v1155_v47 = vpop.xlane.xlu0 %1154 }
 0x5c3   : > { %v1168_v44 = vsub.f32 %v2905_v50, %v1155_v47 }
 0x5c5   : > { %v1173_v48 = vmul.f32 1.442695, %v1168_v44 }
 0x5c6   : > { %v1158_v49 = vpop.xlane.xlu1 %1157 }
 0x5c7   : > { %2429 = vpow2.f32 %v1173_v48  ;;  %v1169_v2 = vsub.f32 %v2912_v53, %v1158_v49 }
 0x5c9   : > { %v1175_v51 = vmul.f32 1.442695, %v1169_v2 }
 0x5ca   : > { %v1214_v52 = vpop.permute.xlu1 %1213  ;;  %v1161_v58 = vpop.xlane.xlu0 %1160 }
 0x5cb   : > { %2431 = vpow2.f32 %v1175_v51  ;;  %v1170_v54 = vsub.f32 %v2919_v4, %v1161_v58  ;;  %2240 = vmatpush3.bf16.msra.mxu0 %v1214_v52 }
 0x5cc   : > { %2241 = vmatprep.subr.bf16.mxu0 %v2497_v22 }
 0x5cd   : > { %v1177_v55 = vmul.f32 1.442695, %v1170_v54 }
 0x5ce   : > { %v1164_v57 = vpop.xlane.xlu0 %1163 }
 0x5cf   : > { %2433 = vpow2.f32 %v1177_v55  ;;  %v1171_v12 = vsub.f32 %v2926_v63, %v1164_v57 }
 0x5d1   : > { %v1179_v50 = vmul.f32 1.442695, %v1171_v12 }
 0x5d3   : > { %2435 = vpow2.f32 %v1179_v50 }
 0x5d4   : > { %v2983_v59 = vpop.eup %2429 }
 0x5d5   : > { %v1183_v53 = vsel %vm905_vm3, %v2983_v59, 0.0 }
 0x5d6   : > { %1184 = vadd.xlane.f32.xlu1 %v1183_v53 }
 0x5d8   : > { %v2987_v60 = vpop.eup %2431 }
 0x5d9   : > { %v1186_v4 = vsel %vm905_vm3, %v2987_v60, 0.0 }
 0x5da   : > { %1187 = vadd.xlane.f32.xlu0 %v1186_v4 }
 0x5dc   : > { %v2991_v61 = vpop.eup %2433 }
 0x5dd   : > { %v1189_v62 = vsel %vm905_vm3, %v2991_v61, 0.0 }
 0x5de   : > { %1190 = vadd.xlane.f32.xlu1 %v1189_v62 }
 0x5e0   : > { %v2995_v63 = vpop.eup %2435 }
 0x5e1   : > { %v1192_v1 = vsel %vm905_vm3, %v2995_v63, 0.0 }
 0x5e2   : > { %v1415_v3 = vpop.xlane.xlu0 %1414  ;;  %1193 = vadd.xlane.f32.xlu0 %v1192_v1 }
 0x5e3   : > { %v1428_v5 = vsub.f32 %v2935_v9, %v1415_v3 }
 0x5e5   : > { %v1433_v14 = vmul.f32 1.442695, %v1428_v5 }
 0x5e7   : > { %2437 = vpow2.f32 %v1433_v14 }
 0x5ea   : > { %v1421_v0 = vpop.xlane.xlu0 %1420 }
 0x5eb   : > { %v1430_v6 = vsub.f32 %v2942_v18, %v1421_v0 }
 0x5ed   : > { %v1437_v7 = vmul.f32 1.442695, %v1430_v6 }
 0x5ee   : > { %v1478_v26 = vpop.permute.xlu0 %1477 }
 0x5ef   : > { %2439 = vpow2.f32 %v1437_v7  ;;  %v1492_v52 = vsel %vm988_vm4, %v1478_v26, 0 }
 0x5f4   : > { %v3001_v8 = vpop.eup %2437 }
 0x5f5   : > { %v1443_v10 = vsel %vm905_vm3, %v3001_v8, 0.0 }
 0x5f6   : > { %1444 = vadd.xlane.f32.xlu1 %v1443_v10 }
 0x5fb   : > { %v1167_v11 = vpop.xlane.xlu1 %1166 }
 0x5fc   : > { %v3005_v13 = vpop.eup %2439  ;;  %v1172_v15 = vsub.f32 %v2949_v31, %v1167_v11 }
 0x5fd   : > { %v1449_v9 = vsel %vm905_vm3, %v3005_v13, 0.0 }
 0x5fe   : > { %v1181_v16 = vmul.f32 1.442695, %v1172_v15  ;;  %1450 = vadd.xlane.f32.xlu1 %v1449_v9 }
 0x5ff   : > { %v1418_v17 = vpop.xlane.xlu1 %1417 }
 0x600   : > { %2441 = vpow2.f32 %v1181_v16  ;;  %v1429_v18 = vsub.f32 %v2954_v37, %v1418_v17 }
 0x602   : > { %v1435_v19 = vmul.f32 1.442695, %v1429_v18 }
 0x603   : > { %v1424_v20 = vpop.xlane.xlu1 %1423 }
 0x604   : > { %2443 = vpow2.f32 %v1435_v19  ;;  %v1431_v37 = vsub.f32 %v2961_v46, %v1424_v20 }
 0x606   : > { %v1439_v38 = vmul.f32 1.442695, %v1431_v37 }
 0x607   : > { %v1212_v23 = vpop.permute.xlu1 %1211 }
 0x608   : > { %2242 = vmatpush3.bf16.msra.mxu0 %v1212_v23 }
 0x609   : > { %2275 = vmatprep.subr.bf16.mxu0 %v2497_v22 }
 0x60d   : > { %v3012_v24 = vpop.eup %2441 }
 0x60e   : > { %v1195_v36 = vsel %vm905_vm3, %v3012_v24, 0.0 }
 0x60f   : > { %1475 = vrot.lane.b32.xlu1 %v2755_v21, %s2503_s30  ;;  %1196 = vadd.xlane.f32.xlu0 %v1195_v36 }
 0x611   : > { %v3018_v25 = vpop.eup %2443 }
 0x612   : > { %v1446_v29 = vsel %vm905_vm3, %v3018_v25, 0.0 }
 0x613   : > { %1447 = vadd.xlane.f32.xlu0 %v1446_v29 }
 0x61f   : > { %v1427_v27 = vpop.xlane.xlu0 %1426 }
 0x620   : > { %v1432_v31 = vsub.f32 %v2974_v56, %v1427_v27 }
 0x622   : > { %v1441_v32 = vmul.f32 1.442695, %v1432_v31 }
 0x624   : > { %2445 = vpow2.f32 %v1441_v32 }
 0x625   : > { %2447 = vpow2.f32 %v1439_v38 }
 0x629   : > { %1473 = vrot.lane.b32.xlu0 %v2760_v30, %s2503_s30 }
 0x631   : > { %v3026_v33 = vpop.eup %2445 }
 0x632   : > { %v1455_v34 = vsel %vm905_vm3, %v3026_v33, 0.0  ;;  %v3030_v39 = vpop.eup %2447 }
 0x633   : > { %1456 = vadd.xlane.f32.xlu1 %v1455_v34  ;;  %v1452_v40 = vsel %vm905_vm3, %v3030_v39, 0.0 }
 0x648   : > { %1453 = vadd.xlane.f32.xlu0 %v1452_v40 }
 0x65e   : > { %1471 = vrot.lane.b32.xlu0 %v2765_v35, %s2503_s30  ;;  %s2507_s30 = smov 16  }
 0x65f   : > { %v1185_v56 = vpop.xlane.xlu1 %1184 }
 0x660   : > { %2449 = vrcp.f32 %v1185_v56 }
 0x662   : > { %1594 = vrot.lane.b32.xlu0 %v2750_v28, %s2504_s26 }
 0x663   : > { %v1188_v46 = vpop.xlane.xlu0 %1187 }
 0x664   : > { %2451 = vrcp.f32 %v1188_v46 }
 0x666   : > { %1592 = vrot.lane.b32.xlu0 %v2755_v21, %s2504_s26 }
 0x667   : > { %v1191_v42 = vpop.xlane.xlu1 %1190 }
 0x668   : > { %2453 = vrcp.f32 %v1191_v42 }
 0x66a   : > { %1590 = vrot.lane.b32.xlu0 %v2760_v30, %s2504_s26 }
 0x66b   : > { %v1194_v47 = vpop.xlane.xlu0 %1193 }
 0x66c   : > { %2455 = vrcp.f32 %v1194_v47 }
 0x66d   : > { %v2450_v44 = vpop.eup %2449 }
 0x66e   : > { %1588 = vrot.lane.b32.xlu0 %v2765_v35, %s2504_s26  ;;  %v1203_v49 = vmul.f32 %v2450_v44, %v2983_v59 }
 0x671   : > { %v2452_v48 = vpop.eup %2451 }
 0x672   : > { %v1204_v2 = vmul.f32 %v2452_v48, %v2987_v60  ;;  %1582 = vrot.lane.b32.xlu0 %v2773_v41, %s2504_s26 }
 0x674   : > { %v1208_v51 = vpack.c.bf16 %v1204_v2, %v1203_v49 }
 0x675   : > { %v2454_v58 = vpop.eup %2453 }
 0x676   : > { %1584 = vrot.lane.b32.xlu0 %v2779_v43, %s2504_s26  ;;  %2244 = vmatmul.mubr.msk.bf16.vlgmr.msra.gmra.mxu0 %vm905_vm3, %v1208_v51  ;;  %v1205_v55 = vmul.f32 %v2454_v58, %v2991_v61 }
 0x677   : > { %2276 = vmatpush3.bf16.msra.mxu0 %v1492_v52  ;;  %2247 = vmatprep.mubr.msk.bf16.mxu0 %vm2498_vm1, %v2497_v22 }
 0x678   : > { %2277 = vmatprep.subr.bf16.mxu0 %v2497_v22 }
 0x679   : > { %v2456_v54 = vpop.eup %2455 }
 0x67a   : > { %1586 = vrot.lane.b32.xlu0 %v2785_v45, %s2504_s26  ;;  %v1206_v41 = vmul.f32 %v2456_v54, %v2995_v63 }
 0x67c   : > { %v1209_v57 = vpack.c.bf16 %v1206_v41, %v1205_v55 }
 0x67e   : > { %2248 = vmatmul.mubr.msk.bf16.gmra.mxu0 %vm905_vm3, %v1209_v57 }
 0x67f   : > { %2251 = vmatprep.mubr.msk.bf16.mxu0 %vm2498_vm1, %v2497_v22  ;;  %v1445_v43 = vpop.xlane.xlu1 %1444 }
 0x687   : > { %v1451_v12 = vpop.xlane.xlu1 %1450 }
 0x68b   : > { %v1476_v50 = vpop.permute.xlu1 %1475 }
 0x68c   : > { %2278 = vmatpush3.bf16.msra.mxu0 %v1476_v50 }
 0x68d   : > { %2279 = vmatprep.subr.bf16.mxu0 %v2497_v22 }
 0x698   : > { %v1197_v59 = vpop.xlane.xlu0 %1196 }
 0x699   : > { %2457 = vrcp.f32 %v1197_v59 }
 0x69c   : > { %v1448_v53 = vpop.xlane.xlu0 %1447 }
 0x69d   : > { %2459 = vrcp.f32 %v1448_v53 }
 0x69e   : > { %2461 = vrcp.f32 %v1445_v43 }
 0x69f   : > { %2463 = vrcp.f32 %v1451_v12  ;;  %v2056_v12 = vld [vmem:[%s3218_s2 + $0x78] sm:$0xff] }
 0x6a0   : > { %v1474_v45 = vpop.permute.xlu0 %1473 }
 0x6a1   : > { %2280 = vmatpush3.bf16.msra.mxu0 %v1474_v45  ;;  %v2057_v45 = vld [vmem:[%s3218_s2 + $0x80] sm:$0xff] }
 0x6a2   : > { %2281 = vmatprep.subr.bf16.mxu0 %v2497_v22 }
 0x6a6   : > { %v2458_v60 = vpop.eup %2457 }
 0x6a7   : > { %v1207_v4 = vmul.f32 %v2458_v60, %v3012_v24 }
 0x6a9   : > { %v1210_v61 = vpack.c.bf16 %v1207_v4, %v1207_v4 }
 0x6aa   : > { %v2460_v62 = vpop.eup %2459 }
 0x6ab   : > { %2252 = vmatmul.mubr.msk.bf16.gmra.mxu0 %vm905_vm3, %v1210_v61  ;;  %v2462_v1 = vpop.eup %2461  ;;  %v1464_v3 = vmul.f32 %v2460_v62, %v3018_v25 }
 0x6ac   : > { %2283 = vmatprep.mubr.msk.bf16.mxu0 %vm2498_vm1, %v2497_v22  ;;  %v1463_v14 = vmul.f32 %v2462_v1, %v3001_v8  ;;  %v2464_v11 = vpop.eup %2463 }
 0x6ad   : > { %v1465_v9 = vmul.f32 %v2464_v11, %v3005_v13 }
 0x6ae   : > { %v1468_v6 = vpack.c.bf16 %v1464_v3, %v1463_v14 }
 0x6bc   : > { %v1457_v5 = vpop.xlane.xlu1 %1456 }
 0x6d1   : > { %v1454_v63 = vpop.xlane.xlu0 %1453 }
 0x6d2   : > { %2465 = vrcp.f32 %v1454_v63  ;;  %v2058_v63 = vld [vmem:[%s3218_s2 + $0x88] sm:$0xff] }
 0x6d3   : > { %2467 = vrcp.f32 %v1457_v5 }
 0x6d5   : > { %v1472_v0 = vpop.permute.xlu0 %1471 }
 0x6d6   : > { %2282 = vmatpush3.bf16.msra.mxu0 %v1472_v0  ;;  %v2059_v0 = vld [vmem:[%s3218_s2 + $0x90] sm:$0xff] }
 0x6d7   : > { %2295 = vmatprep.subr.bf16.mxu0 %v2497_v22 }
 0x6d9   : > { %2284 = vmatmul.mubr.msk.bf16.vlgmr.msra.gmra.mxu0 %vm905_vm3, %v1468_v6  ;;  %v1595_v7 = vpop.permute.xlu0 %1594 }
 0x6da   : > { %v1615_v10 = vsel %vm827_vm2, %v1595_v7, 0  ;;  %2287 = vmatprep.mubr.msk.bf16.mxu0 %vm2498_vm1, %v2497_v22 }
 0x6db   : > { %2296 = vmatpush3.bf16.xpose.msra.mxu0 %v1615_v10 }
 0x6dc   : > { %2297 = vmatprep.subr.bf16.mxu0 %v2497_v22 }
 0x6dd   : > { %v1593_v8 = vpop.permute.xlu0 %1592 }
 0x6de   : > { %v1612_v17 = vsel %vm827_vm2, %v1593_v8, 0 }
 0x6df   : > { %v2466_v15 = vpop.eup %2465 }
 0x6e0   : > { %v1466_v16 = vmul.f32 %v2466_v15, %v3030_v39  ;;  %v2468_v19 = vpop.eup %2467  ;;  %v2060_v15 = vld [vmem:[%s3218_s2 + $0x98] sm:$0xff] }
 0x6e1   : > { %v1467_v20 = vmul.f32 %v2468_v19, %v3026_v33  ;;  %v1591_v23 = vpop.permute.xlu0 %1590 }
 0x6e2   : > { %v1469_v18 = vpack.c.bf16 %v1466_v16, %v1465_v9  ;;  %v1609_v24 = vsel %vm827_vm2, %v1591_v23, 0 }
 0x6e3   : > { %2298 = vmatpush3.bf16.xpose.msra.mxu0 %v1612_v17  ;;  %v1470_v13 = vpack.c.bf16 %v1467_v20, %v1467_v20 }
 0x6e4   : > { %2288 = vmatmul.mubr.msk.bf16.gmra.mxu0 %vm905_vm3, %v1469_v18  ;;  %2299 = vmatprep.subr.bf16.mxu0 %v2497_v22 }
 0x6e5   : > { %2291 = vmatprep.mubr.msk.bf16.mxu0 %vm2498_vm1, %v2497_v22  ;;  %v1589_v36 = vpop.permute.xlu0 %1588 }
 0x6e6   : > { %v1606_v25 = vsel %vm827_vm2, %v1589_v36, 0 }
 0x6e9   : > { %v1583_v29 = vpop.permute.xlu0 %1582 }
 0x6eb   : > { %2300 = vmatpush3.bf16.xpose.msra.mxu0 %v1609_v24 }
 0x6ec   : > { %2292 = vmatmul.mubr.msk.bf16.gmra.mxu0 %vm905_vm3, %v1470_v13  ;;  %2301 = vmatprep.subr.bf16.mxu0 %v2497_v22 }
 0x6ed   : > { %2303 = vmatprep.mubr.msk.bf16.mxu0 %vm2498_vm1, %v2497_v22  ;;  %v1585_v26 = vpop.permute.xlu0 %1584 }
 0x6f1   : > { %v1587_v27 = vpop.permute.xlu0 %1586 }
 0x6f3   : > { %2302 = vmatpush3.bf16.xpose.msra.mxu0 %v1606_v25 }
 0x6f4   : > { %2315 = vmatprep.subr.bf16.mxu0 %v2497_v22 }
 0x6fa   : > { %2304 = vmatmul.mubr.msk.bf16.vlgmr.msra.gmra.mxu0 %vm827_vm2, %v1583_v29 }
 0x6fb   : > { %2307 = vmatprep.mubr.msk.bf16.mxu0 %vm2498_vm1, %v2497_v22 }
 0x702   : > { %2308 = vmatmul.mubr.msk.bf16.gmra.mxu0 %vm827_vm2, %v1585_v26 }
 0x703   : > { %2311 = vmatprep.mubr.msk.bf16.mxu0 %vm2498_vm1, %v2497_v22 }
 0x70a   : > { %2312 = vmatmul.mubr.msk.bf16.gmra.mxu0 %vm827_vm2, %v1587_v27 }
 0x70b   : > { %2323 = vmatprep.mubr.msk.bf16.mxu0 %vm2498_vm1, %v2497_v22 }
 0x736   : > { %v1268_v31 = vpop.f32.mrf.mxu0 }
 0x738   : > { %v2245_v32 = vpop.f32.mrf.mxu0 }
 0x73a   : > { %v1271_v37 = vpop.f32.mrf.mxu0 }
 0x73c   : > { %v2246_v33 = vpop.f32.mrf.mxu0 }
 0x73e   : > { %v3093_v34 = vpop.f32.mrf.mxu0 }
 0x740   : > { %v2249_v38 = vpop.f32.mrf.mxu0 }
 0x742   : > { %v1279_v39 = vpop.f32.mrf.mxu0 }
 0x744   : > { %v2250_v40 = vpop.f32.mrf.mxu0 }
 0x76b   : > { %v3095_v56 = vpop.f32.mrf.mxu0 }
 0x76d   : > { %v2253_v46 = vpop.f32.mrf.mxu0 }
 0x76f   : > { %v1287_v42 = vpop.f32.mrf.mxu0 }
 0x771   : > { %v2254_v47 = vpop.f32.mrf.mxu0 }
 0x799   : > { %v1528_v44 = vpop.f32.mrf.mxu0 }
 0x79b   : > { %v2285_v48 = vpop.f32.mrf.mxu0 }
 0x79d   : > { %v1531_v49 = vpop.f32.mrf.mxu0 }
 0x79f   : > { %v2286_v2 = vpop.f32.mrf.mxu0 }
 0x7a4   : > { %v1536_v51 = vpop.f32.mrf.mxu0 }
 0x7a6   : > { %v2289_v52 = vpop.f32.mrf.mxu0 }
 0x7a8   : > { %v3097_v58 = vpop.f32.mrf.mxu0 }
 0x7aa   : > { %v2290_v54 = vpop.f32.mrf.mxu0 }
 0x7ac   : > { %v3099_v55 = vpop.f32.mrf.mxu0 }
 0x7ae   : > { %v2293_v41 = vpop.f32.mrf.mxu0 }
 0x7b0   : > { %v1547_v57 = vpop.f32.mrf.mxu0 }
 0x7b2   : > { %v2294_v43 = vpop.f32.mrf.mxu0 }
 0x7ba   : > { %v1651_v50 = vpop.f32.mrf.mxu0 }
 0x7bb   : > { %v1652_v59 = vadd.f32 %v2056_v12, %v1651_v50 }
 0x7bc   : > { %v2305_v53 = vpop.f32.mrf.mxu0 }
 0x7bd   : > { %v1673_v60 = vsel %vm905_vm3, %v1652_v59, -inf }
 0x7be   : > { %1674 = vmax.xlane.f32.xlu1 %v1673_v60  ;;  %v1654_v4 = vpop.f32.mrf.mxu0 }
 0x7bf   : > { %v1655_v61 = vadd.f32 %v2057_v45, %v1654_v4 }
 0x7c0   : > { %v2306_v62 = vpop.f32.mrf.mxu0 }
 0x7c1   : > { %v1676_v1 = vsel %vm905_vm3, %v1655_v61, -inf }
 0x7c2   : > { %1677 = vmax.xlane.f32.xlu0 %v1676_v1  ;;  %v1659_v3 = vpop.f32.mrf.mxu0 }
 0x7c3   : > { %v1660_v5 = vadd.f32 %v2058_v63, %v1659_v3 }
 0x7c4   : > { %v2309_v14 = vpop.f32.mrf.mxu0 }
 0x7c5   : > { %v1679_v6 = vsel %vm905_vm3, %v1660_v5, -inf }
 0x7c6   : > { %1680 = vmax.xlane.f32.xlu1 %v1679_v6  ;;  %v1662_v7 = vpop.f32.mrf.mxu0 }
 0x7c7   : > { %v1663_v10 = vadd.f32 %v2059_v0, %v1662_v7 }
 0x7c8   : > { %v2310_v11 = vpop.f32.mrf.mxu0 }
 0x7c9   : > { %v1682_v8 = vsel %vm905_vm3, %v1663_v10, -inf }
 0x7ca   : > { %1683 = vmax.xlane.f32.xlu1 %v1682_v8  ;;  %v1667_v9 = vpop.f32.mrf.mxu0 }
 0x7cb   : > { %v3120_v16 = vadd.f32 %v2060_v15, %v1667_v9 }
 0x7cc   : > { %v2313_v17 = vpop.f32.mrf.mxu0 }
 0x7cd   : > { %v1685_v18 = vsel %vm905_vm3, %v3120_v16, -inf  ;;  %v2384_v17 = vld [vmem:[%s3225_s9] sm:$0xff]  }
 0x7ce   : > { %1686 = vmax.xlane.f32.xlu1 %v1685_v18  ;;  %v1670_v19 = vpop.f32.mrf.mxu0 }
 0x7d0   : > { %v2314_v20 = vpop.f32.mrf.mxu0 }
 0x7d8   : > { %1735 = vrot.lane.b32.xlu0 %v2755_v21, %s2505_s28 }
 0x7dc   : > { %1733 = vrot.lane.b32.xlu0 %v2760_v30, %s2505_s28 }
 0x7e0   : > { %1731 = vrot.lane.b32.xlu0 %v2765_v35, %s2505_s28 }
 0x7e4   : > { %1295 = vrot.lane.b32.xlu0 %v1268_v31, %s2506_s29 }
 0x7e8   : > { %1297 = vrot.lane.b32.xlu0 %v1271_v37, %s2506_s29 }
 0x7ec   : > { %1555 = vrot.lane.b32.xlu0 %v1528_v44, %s2507_s30 }
 0x7f0   : > { %1557 = vrot.lane.b32.xlu0 %v1531_v49, %s2507_s30 }
 0x7f4   : > { %1301 = vrot.lane.b32.xlu0 %v1279_v39, %s2506_s29 }
 0x7f8   : > { %1559 = vrot.lane.b32.xlu0 %v1536_v51, %s2507_s30 }
 0x847   : > { %v1675_v21 = vpop.xlane.xlu1 %1674 }
 0x848   : > { %v1688_v23 = vsub.f32 %v1652_v59, %v1675_v21 }
 0x84a   : > { %v1693_v30 = vmul.f32 1.442695, %v1688_v23 }
 0x84b   : > { %v1678_v24 = vpop.xlane.xlu0 %1677 }
 0x84c   : > { %2469 = vpow2.f32 %v1693_v30  ;;  %v1689_v35 = vsub.f32 %v1655_v61, %v1678_v24 }
 0x84e   : > { %v1695_v13 = vmul.f32 1.442695, %v1689_v35 }
 0x84f   : > { %v1736_v36 = vpop.permute.xlu0 %1735  ;;  %v1681_v25 = vpop.xlane.xlu1 %1680 }
 0x850   : > { %2471 = vpow2.f32 %v1695_v13  ;;  %v1690_v29 = vsub.f32 %v1660_v5, %v1681_v25 }
 0x852   : > { %v1697_v26 = vmul.f32 1.442695, %v1690_v29 }
 0x853   : > { %v1734_v27 = vpop.permute.xlu0 %1733  ;;  %v1684_v31 = vpop.xlane.xlu1 %1683 }
 0x854   : > { %2473 = vpow2.f32 %v1697_v26  ;;  %v1691_v32 = vsub.f32 %v1663_v10, %v1684_v31 }
 0x856   : > { %v1699_v37 = vmul.f32 1.442695, %v1691_v32 }
 0x857   : > { %v3136_v33 = vpop.permute.xlu0 %1731  ;;  %v1687_v41 = vpop.xlane.xlu1 %1686 }
 0x858   : > { %2475 = vpow2.f32 %v1699_v37  ;;  %v1692_v57 = vsub.f32 %v3120_v16, %v1687_v41  ;;  %v2383_v16 = vld [vmem:[%s3225_s9 + $0x8] sm:$0xff]  }
 0x859   : > { %v2470_v38 = vpop.eup %2469 }
 0x85a   : > { %v1703_v39 = vsel %vm905_vm3, %v2470_v38, 0.0  ;;  %v1701_v43 = vmul.f32 1.442695, %v1692_v57 }
 0x85b   : > { %v1296_v40 = vpop.permute.xlu0 %1295  ;;  %1704 = vadd.xlane.f32.xlu1 %v1703_v39 }
 0x85c   : > { %1311 = vst.msk [vmem:[#allocation2] sm:$0xff] %vm1310_vm5, %v1296_v40  ;;  %2477 = vpow2.f32 %v1701_v43 }
 0x85d   : > { %v2472_v46 = vpop.eup %2471 }
 0x85e   : > { %v1706_v42 = vsel %vm905_vm3, %v2472_v46, 0.0 }
 0x85f   : > { %v1298_v47 = vpop.permute.xlu0 %1297  ;;  %1707 = vadd.xlane.f32.xlu1 %v1706_v42 }
 0x860   : > { %1312 = vst.msk [vmem:[#allocation2 + $0x8] sm:$0xff] %vm1310_vm5, %v1298_v47 }
 0x861   : > { %v2474_v44 = vpop.eup %2473 }
 0x862   : > { %v1709_v48 = vsel %vm905_vm3, %v2474_v44, 0.0 }
 0x863   : > { %v1556_v49 = vpop.permute.xlu0 %1555  ;;  %1710 = vadd.xlane.f32.xlu1 %v1709_v48  ;;  %v2067_v48 = vld [vmem:[%s3226_s10] ss:$0 sm:$0xff] }
 0x864   : > { %1571 = vst.msk [vmem:[#allocation2] sm:$0xff] %vm1570_vm6, %v1556_v49 }
 0x865   : > { %v2476_v2 = vpop.eup %2475 }
 0x866   : > { %v1712_v51 = vsel %vm905_vm3, %v2476_v2, 0.0 }
 0x867   : > { %v1558_v52 = vpop.permute.xlu0 %1557  ;;  %1713 = vadd.xlane.f32.xlu1 %v1712_v51 }
 0x868   : > { %1572 = vst.msk [vmem:[#allocation2 + $0x8] sm:$0xff] %vm1570_vm6, %v1558_v52 }
 0x869   : > { %v2478_v12 = vpop.eup %2477 }
 0x86a   : > { %v1715_v50 = vsel %vm905_vm3, %v2478_v12, 0.0 }
 0x86b   : > { %v1302_v54 = vpop.permute.xlu0 %1301 }
 0x86c   : > { %1314 = vst.msk [vmem:[#allocation2 + $0x18] sm:$0xff] %vm1310_vm5, %v1302_v54 }
 0x86f   : > { %v1560_v11 = vpop.permute.xlu0 %1559 }
 0x878   : > { %1737 = vrot.lane.b32.xlu1 %v2750_v28, %s2505_s28 }
 0x89c   : > { %1716 = vadd.xlane.f32.xlu1 %v1715_v50 }
 0x8ad   : > { %1299 = vrot.lane.b32.xlu1 %v3093_v34, %s2506_s29 }
 0x8e4   : > { %v1705_v59 = vpop.xlane.xlu1 %1704 }
 0x8e5   : > { %2479 = vrcp.f32 %v1705_v59 }
 0x8e8   : > { %v1708_v53 = vpop.xlane.xlu1 %1707 }
 0x8e9   : > { %2481 = vrcp.f32 %v1708_v53 }
 0x8ec   : > { %v1711_v45 = vpop.xlane.xlu1 %1710 }
 0x8ed   : > { %2483 = vrcp.f32 %v1711_v45 }
 0x8f0   : > { %v1714_v60 = vpop.xlane.xlu1 %1713 }
 0x8f1   : > { %2485 = vrcp.f32 %v1714_v60 }
 0x8f2   : > { %v2480_v34 = vpop.eup %2479 }
 0x8f3   : > { %v1723_v5 = vmul.f32 %v2480_v34, %v2470_v38 }
 0x8f4   : > { %v1738_v28 = vpop.permute.xlu1 %1737 }
 0x8f5   : > { %v1752_v4 = vsel %vm988_vm4, %v1738_v28, 0 }
 0x8f6   : > { %2316 = vmatpush3.bf16.msra.mxu0 %v1752_v4  ;;  %2355 = vmatpush3.bf16.msra.mxu1 %v1752_v4  ;;  %v2482_v61 = vpop.eup %2481 }
 0x8f7   : > { %2317 = vmatprep.subr.bf16.mxu0 %v2497_v22  ;;  %2352 = vmatprep.subr.bf16.mxu1 %v2497_v22  ;;  %v1724_v1 = vmul.f32 %v2482_v61, %v2472_v46 }
 0x8f9   : > { %v1728_v0 = vpack.c.bf16 %v1724_v1, %v1723_v5 }
 0x8fa   : > { %2318 = vmatpush3.bf16.msra.mxu0 %v1736_v36  ;;  %2356 = vmatpush3.bf16.msra.mxu1 %v1736_v36  ;;  %v2484_v62 = vpop.eup %2483 }
 0x8fb   : > { %2319 = vmatprep.subr.bf16.mxu0 %v2497_v22  ;;  %2353 = vmatprep.subr.bf16.mxu1 %v2497_v22  ;;  %v1725_v14 = vmul.f32 %v2484_v62, %v2474_v44 }
 0x8fe   : > { %v2486_v63 = vpop.eup %2485  ;;  %2320 = vmatpush3.bf16.msra.mxu0 %v1734_v27  ;;  %2357 = vmatpush3.bf16.msra.mxu1 %v1734_v27 }
 0x8ff   : > { %v1726_v3 = vmul.f32 %v2486_v63, %v2476_v2  ;;  %2321 = vmatprep.subr.bf16.mxu0 %v2497_v22  ;;  %2354 = vmatprep.subr.bf16.mxu1 %v2497_v22 }
 0x901   : > { %v1729_v6 = vpack.c.bf16 %v1726_v3, %v1725_v14 }
 0x902   : > { %2322 = vmatpush3.bf16.msra.mxu0 %v3136_v33  ;;  %2358 = vmatpush3.bf16.msra.mxu1 %v3136_v33 }
 0x903   : > { %2335 = vmatprep.subr.bf16.mxu1 %v2497_v22 }
 0x905   : > { %2324 = vmatmul.mubr.msk.bf16.vlgmr.msra.gmra.mxu0 %vm905_vm3, %v1728_v0  ;;  %2328 = vmatmul.mubr.msk.bf16.vlgmr.msra.gmra.mxu1 %vm905_vm3, %v1729_v6 }
 0x906   : > { %2331 = vmatprep.mubr.msk.bf16.mxu1 %vm2498_vm1, %v2497_v22  ;;  %2336 = vmatpush3.bf16.msra.mxu1 %v2383_v16 }
 0x907   : > { %2337 = vmatprep.subr.bf16.mxu1 %v2497_v22 }
 0x90a   : > { %2338 = vmatpush3.bf16.msra.mxu1 %v2384_v17 }
 0x925   : > { %v1717_v7 = vpop.xlane.xlu1 %1716 }
 0x926   : > { %2487 = vrcp.f32 %v1717_v7 }
 0x929   : > { %v1300_v10 = vpop.permute.xlu1 %1299 }
 0x92a   : > { %1313 = vst.msk [vmem:[#allocation2 + $0x10] sm:$0xff] %vm1310_vm5, %v1300_v10 }
 0x92b   : > { %1573 = vst.msk [vmem:[#allocation2 + $0x10] sm:$0xff] %vm1570_vm6, %v1560_v11 }
 0x933   : > { %v2488_v15 = vpop.eup %2487 }
 0x934   : > { %v1727_v8 = vmul.f32 %v2488_v15, %v2478_v12 }
 0x936   : > { %v1730_v9 = vpack.c.bf16 %v1727_v8, %v1727_v8 }
 0x938   : > { %2332 = vmatmul.mubr.msk.bf16.gmra.mxu1 %vm905_vm3, %v1730_v9 }
 0x939   : > { %2339 = vmatprep.mubr.msk.bf16.mxu1 %vm2498_vm1, %v2497_v22 }
 0x9c5   : > { %v1788_v18 = vpop.f32.mrf.mxu0  ;;  %v1796_v19 = vpop.f32.mrf.mxu1 }
 0x9c6   : > { %1815 = vrot.lane.b32.xlu0 %v1788_v18, %s2508_s15 }
 0x9c7   : > { %v2325_v20 = vpop.f32.mrf.mxu0  ;;  %v2329_v21 = vpop.f32.mrf.mxu1 }
 0x9c9   : > { %v1791_v23 = vpop.f32.mrf.mxu0  ;;  %v1799_v30 = vpop.f32.mrf.mxu1 }
 0x9ca   : > { %1821 = vrot.lane.b32.xlu1 %v1799_v30, %s2508_s15  ;;  %1817 = vrot.lane.b32.xlu0 %v1791_v23, %s2508_s15 }
 0x9cb   : > { %v2326_v24 = vpop.f32.mrf.mxu0  ;;  %v2330_v35 = vpop.f32.mrf.mxu1 }
 0x9ce   : > { %1563 = vrot.lane.b32.xlu1 %v3099_v55, %s2507_s30  ;;  %1561 = vrot.lane.b32.xlu0 %v3097_v58, %s2507_s30 }
 0x9d2   : > { %1819 = vrot.lane.b32.xlu0 %v1796_v19, %s2508_s15 }
 0x9d6   : > { %1303 = vrot.lane.b32.xlu0 %v3095_v56, %s2506_s29 }
 0x9f8   : > { %v1804_v13 = vpop.f32.mrf.mxu1 }
 0x9f9   : > { %1823 = vrot.lane.b32.xlu0 %v1804_v13, %s2508_s15 }
 0x9fa   : > { %v2333_v36 = vpop.f32.mrf.mxu1 }
 0x9fc   : > { %v1807_v25 = vpop.f32.mrf.mxu1 }
 0x9fe   : > { %v2334_v29 = vpop.f32.mrf.mxu1 }
 0xa38   : > { %v1816_v26 = vpop.permute.xlu0 %1815 }
 0xa39   : > { %1831 = vst.msk [vmem:[#allocation2] sm:$0xff] %vm1830_vm7, %v1816_v26 }
 0xa3c   : > { %v1818_v27 = vpop.permute.xlu0 %1817  ;;  %v1822_v31 = vpop.permute.xlu1 %1821 }
 0xa3d   : > { %1832 = vst.msk [vmem:[#allocation2 + $0x8] sm:$0xff] %vm1830_vm7, %v1818_v27 }
 0xa40   : > { %v1562_v55 = vpop.permute.xlu0 %1561  ;;  %v1836_v56 = vld [vmem:[#allocation2] sm:$0xff]  ;;  %v1564_v38 = vpop.permute.xlu1 %1563 }
 0xa41   : > { %1574 = vst.msk [vmem:[#allocation2 + $0x18] sm:$0xff] %vm1570_vm6, %v1562_v55 }
 0xa42   : > { %1834 = vst.msk [vmem:[#allocation2 + $0x18] sm:$0xff] %vm1830_vm7, %v1822_v31 }
 0xa44   : > { %v1820_v58 = vpop.permute.xlu0 %1819  ;;  %v1837_v32 = vld [vmem:[#allocation2 + $0x8] sm:$0xff] }
 0xa45   : > { %1833 = vst.msk [vmem:[#allocation2 + $0x10] sm:$0xff] %vm1830_vm7, %v1820_v58  ;;  %v1841_v37 = vpack.c.bf16 %v1837_v32, %v1836_v56 }
 0xa47   : > { %2340 = vmatmul.mubr.msk.bf16.vlgmr.msra.gmra.mxu1 %vm420_vm0, %v1841_v37 }
 0xa48   : > { %v1304_v33 = vpop.permute.xlu0 %1303  ;;  %2343 = vmatprep.mubr.msk.bf16.mxu1 %vm2498_vm1, %v2497_v22 }
 0xa49   : > { %1315 = vst.msk [vmem:[#allocation2 + $0x20] sm:$0xff] %vm1310_vm5, %v1304_v33  ;;  %v1839_v40 = vld [vmem:[#allocation2 + $0x18] sm:$0xff] }
 0xa4a   : > { %1575 = vst.msk [vmem:[#allocation2 + $0x20] sm:$0xff] %vm1570_vm6, %v1564_v38 }
 0xa4c   : > { %v1838_v39 = vld [vmem:[#allocation2 + $0x10] sm:$0xff] }
 0xa4d   : > { %v1842_v46 = vpack.c.bf16 %v1839_v40, %v1838_v39 }
 0xa4f   : > { %2344 = vmatmul.mubr.msk.bf16.gmra.mxu1 %vm420_vm0, %v1842_v46 }
 0xa50   : > { %2347 = vmatprep.mubr.msk.bf16.mxu1 %vm2498_vm1, %v2497_v22 }
 0xa6b   : > { %v1824_v42 = vpop.permute.xlu0 %1823 }
 0xa6c   : > { %1835 = vst.msk [vmem:[#allocation2 + $0x20] sm:$0xff] %vm1830_vm7, %v1824_v42 }
 0xa73   : > { %v1840_v47 = vld [vmem:[#allocation2 + $0x20] sm:$0xff] }
 0xa74   : > { %v1843_v44 = vpack.c.bf16 %v1840_v47, %v1840_v47 }
 0xa76   : > { %2348 = vmatmul.mubr.msk.bf16.gmra.mxu1 %vm420_vm0, %v1843_v44 }
 0xb07   : > { %v1910_v49 = vpop.f32.mrf.mxu1 }
 0xb08   : > { %v1911_v2 = vadd.f32 %v2067_v48, %v1910_v49 }
 0xb09   : > { %v2341_v51 = vpop.f32.mrf.mxu1 }
 0xb0a   : > { %1932 = vst.msk [vmem:[%s410_s22] sm:$0xff] %vm420_vm0, %v1911_v2 }
 0xb0b   : > { %v1913_v22 = vpop.f32.mrf.mxu1 }
 0xb0c   : > { %v1914_v52 = vadd.f32 %v2067_v48, %v1913_v22 }
 0xb0d   : > { %v2342_v54 = vpop.f32.mrf.mxu1 }
 0xb0e   : > { %1933 = vst.msk [vmem:[%s410_s22 + $0x8] sm:$0xff] %vm420_vm0, %v1914_v52 }
 0xb0f   : > { %v1918_v41 = vpop.f32.mrf.mxu1 }
 0xb10   : > { %v1919_v57 = vadd.f32 %v2067_v48, %v1918_v41 }
 0xb11   : > { %v2345_v43 = vpop.f32.mrf.mxu1 }
 0xb12   : > { %1934 = vst.msk [vmem:[%s410_s22 + $0x10] sm:$0xff] %vm420_vm0, %v1919_v57 }
 0xb13   : > { %v1921_v12 = vpop.f32.mrf.mxu1 }
 0xb14   : > { %v1922_v50 = vadd.f32 %v2067_v48, %v1921_v12 }
 0xb15   : > { %v2346_v59 = vpop.f32.mrf.mxu1 }
 0xb16   : > { %1935 = vst.msk [vmem:[%s410_s22 + $0x18] sm:$0xff] %vm420_vm0, %v1922_v50 }
 0xb36   : > { %v1926_v53 = vpop.f32.mrf.mxu1 }
 0xb37   : > { %v1927_v45 = vadd.f32 %v2067_v48, %v1926_v53 }
 0xb38   : > { %v2349_v60 = vpop.f32.mrf.mxu1 }
 0xb39   : > { %1936 = vst.msk [vmem:[%s410_s22 + $0x20] sm:$0xff] %vm420_vm0, %v1927_v45 }
 0xb3a   : > { %v1929_v28 = vpop.f32.mrf.mxu1 }
 0xb3c   : > { %v2350_v4 = vpop.f32.mrf.mxu1 }
 0xb3d PF: > { %s21_s17 = sadd.s32 1, %s2495_s17  }
 0xb3e   : > { %p18_p5 = scmp.ge.s32.totalorder %s21_s17, 4  }
 0xb40   :  { %20 = sbr.rel (!%p18_p5) target bundleno = 1 (0x1), region = 100 }

</bundles_post_ra>
